<compile_context>
chip_gen: v5e
topology: v5e:2x2
jax: 0.10.0
libtpu: 0.0.40
codegen_flags: <defaults>
</compile_context>

<pallas_src>
import functools

import jax
import jax.numpy as jnp
from jax import lax
from jax.experimental import pallas as pl
from jax.experimental.pallas import tpu as pltpu


def _round_up(x, m):
    return (x + m - 1) // m * m


def _cdiv(a, b):
    return -(-a // b)


def lstm_chunk_kernel(x_ref, wih_hbm, whh_hbm, b_ref, wfc_hbm, bfc_ref,
                      out_ref,
                      h_sc, c_sc, pre_sc, wih_sc, whh_sc, wfc_sc, wsem,
                      *, seq_len, steps, mask_tail, unroll):
    """One (batch-shard, time-chunk) grid step of the LSTM; fc on the last h.

    x_ref:   (Tt*Bs, E_pad)   chunk of the embedded sequence, row = t*Bs + b
    wih_hbm: (E_pad, 4H_pad)  HBM (ANY) -> staged into wih_sc once per sweep
    whh_hbm: (H_pad, 4H_pad)  HBM (ANY) -> whh_sc
    b_ref:   (1, 4H_pad)      b_ih + b_hh (f32, gate-padded)
    wfc_hbm: (H_pad, O_pad)   HBM (ANY) -> wfc_sc
    bfc_ref: (1, O_pad)       fc bias (f32)
    out_ref: (Bs, O_pad)      logits for this batch shard (written last chunk)
    h_sc/c_sc: (Bs, H_pad) f32 state, persists across the time grid axis
    pre_sc:  (Tt*Bs, 4H_pad) f32 staged chunk-level input projection
    wih_sc/whh_sc/wfc_sc: single-buffered resident weights in VMEM
    wsem:    DMA semaphores for the weight staging copies
    """
    Bs, H_pad = h_sc.shape
    c_idx = pl.program_id(1)
    last_c = pl.num_programs(1) - 1
    mm_dtype = whh_sc.dtype           # bf16 or f32 MXU operands; acc is f32

    @pl.when(c_idx == 0)
    def _init():
        # Zero carried state and stage weights into single-buffered VMEM
        # scratch once per batch-shard sweep (instead of letting the
        # BlockSpec pipeline keep two copies of each weight matrix).
        h_sc[...] = jnp.zeros_like(h_sc)
        c_sc[...] = jnp.zeros_like(c_sc)
        cps = [pltpu.make_async_copy(wih_hbm, wih_sc, wsem.at[0]),
               pltpu.make_async_copy(whh_hbm, whh_sc, wsem.at[1]),
               pltpu.make_async_copy(wfc_hbm, wfc_sc, wsem.at[2])]
        for cp in cps:
            cp.start()
        for cp in cps:
            cp.wait()

    # Chunk-level input projection: one big MXU matmul (M = steps*Bs rows)
    # with the bias folded in, staged to VMEM so the serial loop below only
    # streams one (Bs, 4H_pad) slice per step.
    pre_sc[...] = (
        jnp.dot(x_ref[...], wih_sc[...], preferred_element_type=jnp.float32)
        + b_ref[...])

    def step(t, carry, *, masked):
        h, c = carry
        row = pl.multiple_of(t * Bs, Bs)
        g = pre_sc[pl.ds(row, Bs), :] + jnp.dot(
            h.astype(mm_dtype), whh_sc[...],
            preferred_element_type=jnp.float32)
        # PyTorch LSTM gate order: input, forget, cell(g), output.
        # H_pad is a multiple of 128, so these are lane-aligned slices.
        i_g = jax.nn.sigmoid(g[:, 0 * H_pad:1 * H_pad])
        f_g = jax.nn.sigmoid(g[:, 1 * H_pad:2 * H_pad])
        g_g = jnp.tanh(g[:, 2 * H_pad:3 * H_pad])
        o_g = jax.nn.sigmoid(g[:, 3 * H_pad:4 * H_pad])
        c_new = f_g * c + i_g * g_g
        h_new = o_g * jnp.tanh(c_new)
        if masked:
            # Ragged tail: freeze the state for padded timesteps.
            valid = (c_idx * steps + t) < seq_len
            h_new = jnp.where(valid, h_new, h)
            c_new = jnp.where(valid, c_new, c)
        return h_new, c_new

    def run_steps(masked):
        h, c = lax.fori_loop(
            0, steps, functools.partial(step, masked=masked),
            (h_sc[...], c_sc[...]), unroll=unroll)
        # State written back to VMEM once per chunk (not per step).
        h_sc[...] = h
        c_sc[...] = c

    if mask_tail:
        # Only the final chunk contains padded timesteps; keep the per-step
        # selects off the critical path of all other chunks.
        @pl.when(c_idx != last_c)
        def _run_full():
            run_steps(masked=False)

        @pl.when(c_idx == last_c)
        def _run_masked():
            run_steps(masked=True)
    else:
        run_steps(masked=False)

    @pl.when(c_idx == last_c)
    def _final():
        # fc(h_T) == fc(lstm_output[:, -1, :]) for a single-layer
        # unidirectional LSTM; dropout is identity in eval mode.
        out_ref[...] = (
            jnp.dot(h_sc[...].astype(mm_dtype), wfc_sc[...],
                    preferred_element_type=jnp.float32)
            + bfc_ref[...]).astype(out_ref.dtype)


def ruugpt_v2_forward(token_ids, params, *, chunk=None,
                      compute_dtype=jnp.float32, batch_shards=None):
    """token_ids: (B, T) int32. Returns (B, output_size) float32 logits."""
    emb = params["embedding"]          # (V, E)
    w_ih = params["w_ih"]              # (4H, E)
    w_hh = params["w_hh"]              # (4H, H)
    b_ih = params["b_ih"]              # (4H,)
    b_hh = params["b_hh"]              # (4H,)
    w_fc = params["w_fc"]              # (O, H)
    b_fc = params["b_fc"]              # (O,)

    B, T = token_ids.shape
    E = emb.shape[1]
    H = w_hh.shape[1]
    O = w_fc.shape[0]

    cdt = jnp.dtype(compute_dtype)
    itemsize = cdt.itemsize
    sublane = 8 * (4 // itemsize)      # 8 for f32, 16 for bf16

    # ---- tile-aligned padded dims -------------------------------------
    E_pad = _round_up(E, 128)
    H_pad = _round_up(H, 128)
    O_pad = _round_up(O, 128)
    B_pad = _round_up(B, sublane)

    # Batch shards feed the leading "parallel" grid axis (v7x: 2 TCs);
    # each shard must itself stay sublane-aligned.
    if batch_shards is None:
        nb = 2 if (B_pad % (2 * sublane) == 0) else 1
    else:
        nb = int(batch_shards)
        B_pad = _round_up(B_pad, nb * sublane)
    Bs = B_pad // nb

    # ---- time-chunk size from a per-generation VMEM budget -------------
    try:
        info = pltpu.get_tpu_info()
        vmem_cap = int(getattr(info, "vmem_capacity_bytes", 64 * 1024 * 1024))
    except Exception:  # pragma: no cover - conservative fallback
        vmem_cap = 64 * 1024 * 1024
    vmem_budget = min(vmem_cap // 2, 64 * 1024 * 1024)
    vmem_limit = min((vmem_cap * 3) // 4, 128 * 1024 * 1024)

    fixed_bytes = (
        (E_pad * 4 * H_pad + H_pad * 4 * H_pad + H_pad * O_pad) * itemsize  # weights (single-buffered)
        + 2 * (4 * H_pad + O_pad) * 4 * 2                                   # biases (double-buffered)
        + 2 * Bs * H_pad * 4                                                # h, c state
        + 2 * Bs * O_pad * 4)                                               # output block
    per_step_bytes = Bs * (2 * E_pad * itemsize + 4 * H_pad * 4)            # 2x x-block + pre scratch
    tt_cap = max(1, (vmem_budget - fixed_bytes) // per_step_bytes)

    if chunk is None:
        chunk = max(16, _cdiv(512, Bs))    # target M = Tt*Bs >= 512 for the MXU
    Tt = int(max(1, min(chunk, T, tt_cap)))
    num_chunks = _cdiv(T, Tt)
    T_pad = num_chunks * Tt
    mask_tail = (T_pad != T)

    # ---- glue (plain JAX): gather, padding, shard/chunk flattening ------
    emb_p = jnp.pad(emb, ((0, 0), (0, E_pad - E))).astype(cdt)     # (V, E_pad)
    x = jnp.take(emb_p, token_ids, axis=0)                         # (B, T, E_pad)
    x = jnp.pad(x, ((0, B_pad - B), (0, T_pad - T), (0, 0)))       # (B_pad, T_pad, E_pad)
    x = x.reshape(nb, Bs, T_pad, E_pad).transpose(0, 2, 1, 3)      # (nb, T_pad, Bs, E_pad)
    x = x.reshape(nb * T_pad * Bs, E_pad)                          # row = ((s*T_pad)+t)*Bs + b

    def pad_gate_cols(w_t):            # (K, 4H) -> (K, 4*H_pad), per-gate pad
        K = w_t.shape[0]
        w4 = w_t.reshape(K, 4, H)
        w4 = jnp.pad(w4, ((0, 0), (0, 0), (0, H_pad - H)))
        return w4.reshape(K, 4 * H_pad)

    wih_t = jnp.pad(pad_gate_cols(w_ih.T), ((0, E_pad - E), (0, 0))).astype(cdt)
    whh_t = jnp.pad(pad_gate_cols(w_hh.T), ((0, H_pad - H), (0, 0))).astype(cdt)
    b = jnp.pad((b_ih + b_hh).reshape(4, H), ((0, 0), (0, H_pad - H)))
    b = b.reshape(1, 4 * H_pad).astype(jnp.float32)
    wfc_t = jnp.pad(w_fc.T, ((0, H_pad - H), (0, O_pad - O))).astype(cdt)
    bfc = jnp.pad(b_fc, (0, O_pad - O)).reshape(1, O_pad).astype(jnp.float32)

    kernel = functools.partial(
        lstm_chunk_kernel, seq_len=T, steps=Tt, mask_tail=mask_tail,
        unroll=min(Tt, 4))

    nc = num_chunks
    grid_spec = pltpu.PrefetchScalarGridSpec(
        num_scalar_prefetch=0,
        grid=(nb, num_chunks),
        in_specs=[
            # Streamed activation chunks (auto double-buffered).
            pl.BlockSpec((Tt * Bs, E_pad),
                         lambda s, c, nc=nc: (s * nc + c, 0)),
            # Big weights left in HBM; staged manually (single-buffered).
            pl.BlockSpec(memory_space=pl.ANY),   # W_ih
            pl.BlockSpec(memory_space=pl.ANY),   # W_hh
            pl.BlockSpec((1, 4 * H_pad), lambda s, c: (0, 0)),   # gate bias
            pl.BlockSpec(memory_space=pl.ANY),   # W_fc
            pl.BlockSpec((1, O_pad), lambda s, c: (0, 0)),       # fc bias
        ],
        out_specs=pl.BlockSpec((Bs, O_pad), lambda s, c: (s, 0)),
        scratch_shapes=[
            pltpu.VMEM((Bs, H_pad), jnp.float32),            # h state
            pltpu.VMEM((Bs, H_pad), jnp.float32),            # c state
            pltpu.VMEM((Tt * Bs, 4 * H_pad), jnp.float32),   # staged chunk pre-activations
            pltpu.VMEM((E_pad, 4 * H_pad), cdt),             # resident W_ih
            pltpu.VMEM((H_pad, 4 * H_pad), cdt),             # resident W_hh
            pltpu.VMEM((H_pad, O_pad), cdt),                 # resident W_fc
            pltpu.SemaphoreType.DMA((3,)),                   # weight-load semaphores
        ],
    )

    out = pl.pallas_call(
        kernel,
        out_shape=jax.ShapeDtypeStruct((B_pad, O_pad), jnp.float32),
        grid_spec=grid_spec,
        compiler_params=pltpu.CompilerParams(
            dimension_semantics=("parallel", "arbitrary"),
            vmem_limit_bytes=int(vmem_limit)),
    )(x, wih_t, whh_t, b, wfc_t, bfc)
    return out[:B, :O]


def make_params(key, vocab_size, embedding_dim, hidden_size, output_size):
    ks = jax.random.split(key, 7)
    scale = 0.1
    emb = scale * jax.random.normal(ks[0], (vocab_size, embedding_dim), jnp.float32)
    emb = emb.at[0].set(0.0)  # padding_idx=0
    return {
        "embedding": emb,
        "w_ih": scale * jax.random.normal(ks[1], (4 * hidden_size, embedding_dim), jnp.float32),
        "w_hh": scale * jax.random.normal(ks[2], (4 * hidden_size, hidden_size), jnp.float32),
        "b_ih": scale * jax.random.normal(ks[3], (4 * hidden_size,), jnp.float32),
        "b_hh": scale * jax.random.normal(ks[4], (4 * hidden_size,), jnp.float32),
        "w_fc": scale * jax.random.normal(ks[5], (output_size, hidden_size), jnp.float32),
        "b_fc": scale * jax.random.normal(ks[6], (output_size,), jnp.float32),
    }


def reference_forward(token_ids, params):
    """Pure-JAX reference reproducing the PyTorch forward (eval mode)."""
    emb = jnp.take(params["embedding"], token_ids, axis=0)   # (B, T, E)
    B, T, _ = emb.shape
    H = params["w_hh"].shape[1]
    h = jnp.zeros((B, H), jnp.float32)
    c = jnp.zeros((B, H), jnp.float32)
    wih_t = params["w_ih"].T
    whh_t = params["w_hh"].T
    b = params["b_ih"] + params["b_hh"]
    for t in range(T):
        gates = emb[:, t, :] @ wih_t + h @ whh_t + b
        i_g = jax.nn.sigmoid(gates[:, 0 * H:1 * H])
        f_g = jax.nn.sigmoid(gates[:, 1 * H:2 * H])
        g_g = jnp.tanh(gates[:, 2 * H:3 * H])
        o_g = jax.nn.sigmoid(gates[:, 3 * H:4 * H])
        c = f_g * c + i_g * g_g
        h = o_g * jnp.tanh(c)
    return h @ params["w_fc"].T + params["b_fc"]


if __name__ == "__main__":
    vocab_size = 50
    embedding_dim = 32
    hidden_size = 32
    output_size = 4

    key = jax.random.PRNGKey(0)
    pkey, xkey, x2key = jax.random.split(key, 3)
    params = make_params(pkey, vocab_size, embedding_dim, hidden_size, output_size)

    # Test 1: f32 path, 2 time-chunks, batch padded 2 -> 8 (single shard).
    tok1 = jax.random.randint(xkey, (2, 8), 0, vocab_size, dtype=jnp.int32)
    ref1 = reference_forward(tok1, params)
    out1 = jax.block_until_ready(
        ruugpt_v2_forward(tok1, params, chunk=4, compute_dtype=jnp.float32))
    assert out1.shape == (2, output_size)
    assert jnp.allclose(out1, ref1, atol=1e-4, rtol=1e-4), "f32 kernel mismatch vs reference"

    # Test 2: bf16 MXU operands (f32 gates / cell state), single chunk.
    out2 = jax.block_until_ready(
        ruugpt_v2_forward(tok1, params, chunk=8, compute_dtype=jnp.bfloat16))
    assert jnp.allclose(out2, ref1, atol=5e-2, rtol=5e-2), "bf16 kernel mismatch vs reference"

    # Test 3: ragged tail (T=10, chunk=4 -> masked last chunk) + 2 batch
    # shards exercising the leading "parallel" grid axis.
    tok3 = jax.random.randint(x2key, (16, 10), 0, vocab_size, dtype=jnp.int32)
    ref3 = reference_forward(tok3, params)
    out3 = jax.block_until_ready(
        ruugpt_v2_forward(tok3, params, chunk=4, compute_dtype=jnp.float32))
    assert out3.shape == (16, output_size)
    assert jnp.allclose(out3, ref3, atol=1e-4, rtol=1e-4), "sharded/masked kernel mismatch"

    print("KERNEL_OK")
</pallas_src>

<mosaic_0001>
module attributes {stable_mosaic.version = 11 : i64} {
  func.func @lstm_chunk_kernel(%arg0: i32, %arg1: i32, %arg2: memref<32x128xf32, #tpu.memory_space<vmem>>, %arg3: memref<128x512xf32, #tpu.memory_space<any>>, %arg4: memref<128x512xf32, #tpu.memory_space<any>>, %arg5: memref<1x512xf32, #tpu.memory_space<vmem>>, %arg6: memref<128x128xf32, #tpu.memory_space<any>>, %arg7: memref<1x128xf32, #tpu.memory_space<vmem>>, %arg8: memref<8x128xf32, #tpu.memory_space<vmem>>, %arg9: memref<8x128xf32, #tpu.memory_space<vmem>>, %arg10: memref<8x128xf32, #tpu.memory_space<vmem>>, %arg11: memref<32x512xf32, #tpu.memory_space<vmem>>, %arg12: memref<128x512xf32, #tpu.memory_space<vmem>>, %arg13: memref<128x512xf32, #tpu.memory_space<vmem>>, %arg14: memref<128x128xf32, #tpu.memory_space<vmem>>, %arg15: memref<3x!tpu.dma_semaphore, #tpu.memory_space<semaphore_mem>>) attributes {dimension_semantics = [#tpu.dimension_semantics<parallel>, #tpu.dimension_semantics<arbitrary>], iteration_bounds = array<i64: 1, 2>, scalar_prefetch = 0 : i64, scratch_operands = 7 : i64, tpu.core_type = #tpu.core_type<tc>, window_params = [{transform_indices = @transform_0, window_bounds = array<i64: 32, 128>}, {}, {}, {pipeline_mode = #tpu.pipeline_mode<synchronous>, transform_indices = @transform_3, window_bounds = array<i64: 1, 512>}, {}, {pipeline_mode = #tpu.pipeline_mode<synchronous>, transform_indices = @transform_5, window_bounds = array<i64: 1, 128>}, {transform_indices = @transform_6, window_bounds = array<i64: 8, 128>}]} {
    %c0_i32 = arith.constant 0 : i32
    %0 = arith.cmpi eq, %arg1, %c0_i32 : i32
    %1 = arith.extui %0 : i1 to i32
    %c0_i32_0 = arith.constant 0 : i32
    %2 = arith.cmpi ne, %1, %c0_i32_0 : i32
    scf.if %2 {
      %cst_50 = arith.constant 0.000000e+00 : f32
      %145 = vector.broadcast %cst_50 : f32 to vector<8x128xf32>
      %c0_51 = arith.constant 0 : index
      %c0_52 = arith.constant 0 : index
      %146 = vector.load %arg9[%c0_51, %c0_52] : memref<8x128xf32, #tpu.memory_space<vmem>>, vector<8x128xf32>
      tpu.vector_store %arg9[%c0_51, %c0_52], %145 {strides = array<i32>} : memref<8x128xf32, #tpu.memory_space<vmem>>, vector<8x128xf32>,
      %cst_53 = arith.constant 0.000000e+00 : f32
      %147 = vector.broadcast %cst_53 : f32 to vector<8x128xf32>
      %c0_54 = arith.constant 0 : index
      %c0_55 = arith.constant 0 : index
      %148 = vector.load %arg10[%c0_54, %c0_55] : memref<8x128xf32, #tpu.memory_space<vmem>>, vector<8x128xf32>
      tpu.vector_store %arg10[%c0_54, %c0_55], %147 {strides = array<i32>} : memref<8x128xf32, #tpu.memory_space<vmem>>, vector<8x128xf32>,
      %c0_i32_56 = arith.constant 0 : i32
      %149 = tpu.memref_slice %arg15[%c0_i32_56] : memref<3x!tpu.dma_semaphore, #tpu.memory_space<semaphore_mem>> -> memref<1x!tpu.dma_semaphore, #tpu.memory_space<semaphore_mem>>
      %150 = tpu.memref_squeeze %149 : memref<1x!tpu.dma_semaphore, #tpu.memory_space<semaphore_mem>> -> memref<!tpu.dma_semaphore, #tpu.memory_space<semaphore_mem>>
      tpu.enqueue_dma source(%arg3 : memref<128x512xf32, #tpu.memory_space<any>>) target(%arg12 : memref<128x512xf32, #tpu.memory_space<vmem>>) target_semaphore(%150 : memref<!tpu.dma_semaphore, #tpu.memory_space<semaphore_mem>>)
      %c1_i32_57 = arith.constant 1 : i32
      %151 = tpu.memref_slice %arg15[%c1_i32_57] : memref<3x!tpu.dma_semaphore, #tpu.memory_space<semaphore_mem>> -> memref<1x!tpu.dma_semaphore, #tpu.memory_space<semaphore_mem>>
      %152 = tpu.memref_squeeze %151 : memref<1x!tpu.dma_semaphore, #tpu.memory_space<semaphore_mem>> -> memref<!tpu.dma_semaphore, #tpu.memory_space<semaphore_mem>>
      tpu.enqueue_dma source(%arg4 : memref<128x512xf32, #tpu.memory_space<any>>) target(%arg13 : memref<128x512xf32, #tpu.memory_space<vmem>>) target_semaphore(%152 : memref<!tpu.dma_semaphore, #tpu.memory_space<semaphore_mem>>)
      %c2_i32_58 = arith.constant 2 : i32
      %153 = tpu.memref_slice %arg15[%c2_i32_58] : memref<3x!tpu.dma_semaphore, #tpu.memory_space<semaphore_mem>> -> memref<1x!tpu.dma_semaphore, #tpu.memory_space<semaphore_mem>>
      %154 = tpu.memref_squeeze %153 : memref<1x!tpu.dma_semaphore, #tpu.memory_space<semaphore_mem>> -> memref<!tpu.dma_semaphore, #tpu.memory_space<semaphore_mem>>
      tpu.enqueue_dma source(%arg6 : memref<128x128xf32, #tpu.memory_space<any>>) target(%arg14 : memref<128x128xf32, #tpu.memory_space<vmem>>) target_semaphore(%154 : memref<!tpu.dma_semaphore, #tpu.memory_space<semaphore_mem>>)
      %c0_i32_59 = arith.constant 0 : i32
      %155 = tpu.memref_slice %arg15[%c0_i32_59] : memref<3x!tpu.dma_semaphore, #tpu.memory_space<semaphore_mem>> -> memref<1x!tpu.dma_semaphore, #tpu.memory_space<semaphore_mem>>
      %156 = tpu.memref_squeeze %155 : memref<1x!tpu.dma_semaphore, #tpu.memory_space<semaphore_mem>> -> memref<!tpu.dma_semaphore, #tpu.memory_space<semaphore_mem>>
      tpu.wait_dma2 semaphore(%156 : memref<!tpu.dma_semaphore, #tpu.memory_space<semaphore_mem>>) src(%arg3 : memref<128x512xf32, #tpu.memory_space<any>>) dst(%arg12 : memref<128x512xf32, #tpu.memory_space<vmem>>)
      %c1_i32_60 = arith.constant 1 : i32
      %157 = tpu.memref_slice %arg15[%c1_i32_60] : memref<3x!tpu.dma_semaphore, #tpu.memory_space<semaphore_mem>> -> memref<1x!tpu.dma_semaphore, #tpu.memory_space<semaphore_mem>>
      %158 = tpu.memref_squeeze %157 : memref<1x!tpu.dma_semaphore, #tpu.memory_space<semaphore_mem>> -> memref<!tpu.dma_semaphore, #tpu.memory_space<semaphore_mem>>
      tpu.wait_dma2 semaphore(%158 : memref<!tpu.dma_semaphore, #tpu.memory_space<semaphore_mem>>) src(%arg4 : memref<128x512xf32, #tpu.memory_space<any>>) dst(%arg13 : memref<128x512xf32, #tpu.memory_space<vmem>>)
      %c2_i32_61 = arith.constant 2 : i32
      %159 = tpu.memref_slice %arg15[%c2_i32_61] : memref<3x!tpu.dma_semaphore, #tpu.memory_space<semaphore_mem>> -> memref<1x!tpu.dma_semaphore, #tpu.memory_space<semaphore_mem>>
      %160 = tpu.memref_squeeze %159 : memref<1x!tpu.dma_semaphore, #tpu.memory_space<semaphore_mem>> -> memref<!tpu.dma_semaphore, #tpu.memory_space<semaphore_mem>>
      tpu.wait_dma2 semaphore(%160 : memref<!tpu.dma_semaphore, #tpu.memory_space<semaphore_mem>>) src(%arg6 : memref<128x128xf32, #tpu.memory_space<any>>) dst(%arg14 : memref<128x128xf32, #tpu.memory_space<vmem>>)
    } else {
    }
    %c0 = arith.constant 0 : index
    %c0_1 = arith.constant 0 : index
    %3 = vector.load %arg2[%c0, %c0_1] : memref<32x128xf32, #tpu.memory_space<vmem>>, vector<32x128xf32>
    %c0_2 = arith.constant 0 : index
    %c0_3 = arith.constant 0 : index
    %4 = vector.load %arg12[%c0_2, %c0_3] : memref<128x512xf32, #tpu.memory_space<vmem>>, vector<128x512xf32>
    %cst = arith.constant dense<0.000000e+00> : vector<32x512xf32>
    %5 = tpu.matmul %3, %4, %cst {dimension_numbers = #tpu.dot_dimension_numbers<[1], [0], [0], [1], [0, 0, 1, 1], [], []>} : vector<32x128xf32>, vector<128x512xf32>, vector<32x512xf32> -> vector<32x512xf32>
    %c0_4 = arith.constant 0 : index
    %c0_5 = arith.constant 0 : index
    %6 = vector.load %arg5[%c0_4, %c0_5] : memref<1x512xf32, #tpu.memory_space<vmem>>, vector<1x512xf32>
    %7 = vector.broadcast %6 : vector<1x512xf32> to vector<32x512xf32>
    %8 = arith.addf %5, %7 : vector<32x512xf32>
    %c0_6 = arith.constant 0 : index
    %c0_7 = arith.constant 0 : index
    %9 = vector.load %arg11[%c0_6, %c0_7] : memref<32x512xf32, #tpu.memory_space<vmem>>, vector<32x512xf32>
    tpu.vector_store %arg11[%c0_6, %c0_7], %8 {strides = array<i32>} : memref<32x512xf32, #tpu.memory_space<vmem>>, vector<32x512xf32>,
    %c0_8 = arith.constant 0 : index
    %c0_9 = arith.constant 0 : index
    %10 = vector.load %arg9[%c0_8, %c0_9] : memref<8x128xf32, #tpu.memory_space<vmem>>, vector<8x128xf32>
    %c0_10 = arith.constant 0 : index
    %c0_11 = arith.constant 0 : index
    %11 = vector.load %arg10[%c0_10, %c0_11] : memref<8x128xf32, #tpu.memory_space<vmem>>, vector<8x128xf32>
    %c0_i32_12 = arith.constant 0 : i32
    %c8_i32 = arith.constant 8 : i32
    %12 = arith.muli %c0_i32_12, %c8_i32 : i32
    %13 = tpu.assume_multiple %12, 8 : i32
    %14 = arith.index_cast %13 : i32 to index
    %c0_13 = arith.constant 0 : index
    %15 = vector.load %arg11[%14, %c0_13] : memref<32x512xf32, #tpu.memory_space<vmem>>, vector<8x512xf32>
    %c0_14 = arith.constant 0 : index
    %c0_15 = arith.constant 0 : index
    %16 = vector.load %arg13[%c0_14, %c0_15] : memref<128x512xf32, #tpu.memory_space<vmem>>, vector<128x512xf32>
    %cst_16 = arith.constant dense<0.000000e+00> : vector<8x512xf32>
    %17 = tpu.matmul %10, %16, %cst_16 {dimension_numbers = #tpu.dot_dimension_numbers<[1], [0], [0], [1], [0, 0, 1, 1], [], []>} : vector<8x128xf32>, vector<128x512xf32>, vector<8x512xf32> -> vector<8x512xf32>
    %18 = arith.addf %15, %17 : vector<8x512xf32>
    %19 = vector.extract_strided_slice %18 {offsets = [0, 0], sizes = [8, 128], strides = [1, 1]} : vector<8x512xf32> to vector<8x128xf32>
    %20 = arith.negf %19 : vector<8x128xf32>
    %21 = math.exp %20 : vector<8x128xf32>
    %cst_17 = arith.constant 1.000000e+00 : f32
    %22 = vector.broadcast %cst_17 : f32 to vector<8x128xf32>
    %23 = arith.addf %22, %21 : vector<8x128xf32>
    %24 = arith.divf %22, %23 : vector<8x128xf32>
    %25 = vector.extract_strided_slice %18 {offsets = [0, 128], sizes = [8, 128], strides = [1, 1]} : vector<8x512xf32> to vector<8x128xf32>
    %26 = arith.negf %25 : vector<8x128xf32>
    %27 = math.exp %26 : vector<8x128xf32>
    %cst_18 = arith.constant 1.000000e+00 : f32
    %28 = vector.broadcast %cst_18 : f32 to vector<8x128xf32>
    %29 = arith.addf %28, %27 : vector<8x128xf32>
    %30 = arith.divf %28, %29 : vector<8x128xf32>
    %31 = vector.extract_strided_slice %18 {offsets = [0, 256], sizes = [8, 128], strides = [1, 1]} : vector<8x512xf32> to vector<8x128xf32>
    %32 = math.tanh %31 : vector<8x128xf32>
    %33 = vector.extract_strided_slice %18 {offsets = [0, 384], sizes = [8, 128], strides = [1, 1]} : vector<8x512xf32> to vector<8x128xf32>
    %34 = arith.negf %33 : vector<8x128xf32>
    %35 = math.exp %34 : vector<8x128xf32>
    %cst_19 = arith.constant 1.000000e+00 : f32
    %36 = vector.broadcast %cst_19 : f32 to vector<8x128xf32>
    %37 = arith.addf %36, %35 : vector<8x128xf32>
    %38 = arith.divf %36, %37 : vector<8x128xf32>
    %39 = arith.mulf %30, %11 : vector<8x128xf32>
    %40 = arith.mulf %24, %32 : vector<8x128xf32>
    %41 = arith.addf %39, %40 : vector<8x128xf32>
    %42 = math.tanh %41 : vector<8x128xf32>
    %43 = arith.mulf %38, %42 : vector<8x128xf32>
    %c1_i32 = arith.constant 1 : i32
    %c8_i32_20 = arith.constant 8 : i32
    %44 = arith.muli %c1_i32, %c8_i32_20 : i32
    %45 = tpu.assume_multiple %44, 8 : i32
    %46 = arith.index_cast %45 : i32 to index
    %c0_21 = arith.constant 0 : index
    %47 = vector.load %arg11[%46, %c0_21] : memref<32x512xf32, #tpu.memory_space<vmem>>, vector<8x512xf32>
    %c0_22 = arith.constant 0 : index
    %c0_23 = arith.constant 0 : index
    %48 = vector.load %arg13[%c0_22, %c0_23] : memref<128x512xf32, #tpu.memory_space<vmem>>, vector<128x512xf32>
    %cst_24 = arith.constant dense<0.000000e+00> : vector<8x512xf32>
    %49 = tpu.matmul %43, %48, %cst_24 {dimension_numbers = #tpu.dot_dimension_numbers<[1], [0], [0], [1], [0, 0, 1, 1], [], []>} : vector<8x128xf32>, vector<128x512xf32>, vector<8x512xf32> -> vector<8x512xf32>
    %50 = arith.addf %47, %49 : vector<8x512xf32>
    %51 = vector.extract_strided_slice %50 {offsets = [0, 0], sizes = [8, 128], strides = [1, 1]} : vector<8x512xf32> to vector<8x128xf32>
    %52 = arith.negf %51 : vector<8x128xf32>
    %53 = math.exp %52 : vector<8x128xf32>
    %cst_25 = arith.constant 1.000000e+00 : f32
    %54 = vector.broadcast %cst_25 : f32 to vector<8x128xf32>
    %55 = arith.addf %54, %53 : vector<8x128xf32>
    %56 = arith.divf %54, %55 : vector<8x128xf32>
    %57 = vector.extract_strided_slice %50 {offsets = [0, 128], sizes = [8, 128], strides = [1, 1]} : vector<8x512xf32> to vector<8x128xf32>
    %58 = arith.negf %57 : vector<8x128xf32>
    %59 = math.exp %58 : vector<8x128xf32>
    %cst_26 = arith.constant 1.000000e+00 : f32
    %60 = vector.broadcast %cst_26 : f32 to vector<8x128xf32>
    %61 = arith.addf %60, %59 : vector<8x128xf32>
    %62 = arith.divf %60, %61 : vector<8x128xf32>
    %63 = vector.extract_strided_slice %50 {offsets = [0, 256], sizes = [8, 128], strides = [1, 1]} : vector<8x512xf32> to vector<8x128xf32>
    %64 = math.tanh %63 : vector<8x128xf32>
    %65 = vector.extract_strided_slice %50 {offsets = [0, 384], sizes = [8, 128], strides = [1, 1]} : vector<8x512xf32> to vector<8x128xf32>
    %66 = arith.negf %65 : vector<8x128xf32>
    %67 = math.exp %66 : vector<8x128xf32>
    %cst_27 = arith.constant 1.000000e+00 : f32
    %68 = vector.broadcast %cst_27 : f32 to vector<8x128xf32>
    %69 = arith.addf %68, %67 : vector<8x128xf32>
    %70 = arith.divf %68, %69 : vector<8x128xf32>
    %71 = arith.mulf %62, %41 : vector<8x128xf32>
    %72 = arith.mulf %56, %64 : vector<8x128xf32>
    %73 = arith.addf %71, %72 : vector<8x128xf32>
    %74 = math.tanh %73 : vector<8x128xf32>
    %75 = arith.mulf %70, %74 : vector<8x128xf32>
    %c2_i32 = arith.constant 2 : i32
    %c8_i32_28 = arith.constant 8 : i32
    %76 = arith.muli %c2_i32, %c8_i32_28 : i32
    %77 = tpu.assume_multiple %76, 8 : i32
    %78 = arith.index_cast %77 : i32 to index
    %c0_29 = arith.constant 0 : index
    %79 = vector.load %arg11[%78, %c0_29] : memref<32x512xf32, #tpu.memory_space<vmem>>, vector<8x512xf32>
    %c0_30 = arith.constant 0 : index
    %c0_31 = arith.constant 0 : index
    %80 = vector.load %arg13[%c0_30, %c0_31] : memref<128x512xf32, #tpu.memory_space<vmem>>, vector<128x512xf32>
    %cst_32 = arith.constant dense<0.000000e+00> : vector<8x512xf32>
    %81 = tpu.matmul %75, %80, %cst_32 {dimension_numbers = #tpu.dot_dimension_numbers<[1], [0], [0], [1], [0, 0, 1, 1], [], []>} : vector<8x128xf32>, vector<128x512xf32>, vector<8x512xf32> -> vector<8x512xf32>
    %82 = arith.addf %79, %81 : vector<8x512xf32>
    %83 = vector.extract_strided_slice %82 {offsets = [0, 0], sizes = [8, 128], strides = [1, 1]} : vector<8x512xf32> to vector<8x128xf32>
    %84 = arith.negf %83 : vector<8x128xf32>
    %85 = math.exp %84 : vector<8x128xf32>
    %cst_33 = arith.constant 1.000000e+00 : f32
    %86 = vector.broadcast %cst_33 : f32 to vector<8x128xf32>
    %87 = arith.addf %86, %85 : vector<8x128xf32>
    %88 = arith.divf %86, %87 : vector<8x128xf32>
    %89 = vector.extract_strided_slice %82 {offsets = [0, 128], sizes = [8, 128], strides = [1, 1]} : vector<8x512xf32> to vector<8x128xf32>
    %90 = arith.negf %89 : vector<8x128xf32>
    %91 = math.exp %90 : vector<8x128xf32>
    %cst_34 = arith.constant 1.000000e+00 : f32
    %92 = vector.broadcast %cst_34 : f32 to vector<8x128xf32>
    %93 = arith.addf %92, %91 : vector<8x128xf32>
    %94 = arith.divf %92, %93 : vector<8x128xf32>
    %95 = vector.extract_strided_slice %82 {offsets = [0, 256], sizes = [8, 128], strides = [1, 1]} : vector<8x512xf32> to vector<8x128xf32>
    %96 = math.tanh %95 : vector<8x128xf32>
    %97 = vector.extract_strided_slice %82 {offsets = [0, 384], sizes = [8, 128], strides = [1, 1]} : vector<8x512xf32> to vector<8x128xf32>
    %98 = arith.negf %97 : vector<8x128xf32>
    %99 = math.exp %98 : vector<8x128xf32>
    %cst_35 = arith.constant 1.000000e+00 : f32
    %100 = vector.broadcast %cst_35 : f32 to vector<8x128xf32>
    %101 = arith.addf %100, %99 : vector<8x128xf32>
    %102 = arith.divf %100, %101 : vector<8x128xf32>
    %103 = arith.mulf %94, %73 : vector<8x128xf32>
    %104 = arith.mulf %88, %96 : vector<8x128xf32>
    %105 = arith.addf %103, %104 : vector<8x128xf32>
    %106 = math.tanh %105 : vector<8x128xf32>
    %107 = arith.mulf %102, %106 : vector<8x128xf32>
    %c3_i32 = arith.constant 3 : i32
    %c8_i32_36 = arith.constant 8 : i32
    %108 = arith.muli %c3_i32, %c8_i32_36 : i32
    %109 = tpu.assume_multiple %108, 8 : i32
    %110 = arith.index_cast %109 : i32 to index
    %c0_37 = arith.constant 0 : index
    %111 = vector.load %arg11[%110, %c0_37] : memref<32x512xf32, #tpu.memory_space<vmem>>, vector<8x512xf32>
    %c0_38 = arith.constant 0 : index
    %c0_39 = arith.constant 0 : index
    %112 = vector.load %arg13[%c0_38, %c0_39] : memref<128x512xf32, #tpu.memory_space<vmem>>, vector<128x512xf32>
    %cst_40 = arith.constant dense<0.000000e+00> : vector<8x512xf32>
    %113 = tpu.matmul %107, %112, %cst_40 {dimension_numbers = #tpu.dot_dimension_numbers<[1], [0], [0], [1], [0, 0, 1, 1], [], []>} : vector<8x128xf32>, vector<128x512xf32>, vector<8x512xf32> -> vector<8x512xf32>
    %114 = arith.addf %111, %113 : vector<8x512xf32>
    %115 = vector.extract_strided_slice %114 {offsets = [0, 0], sizes = [8, 128], strides = [1, 1]} : vector<8x512xf32> to vector<8x128xf32>
    %116 = arith.negf %115 : vector<8x128xf32>
    %117 = math.exp %116 : vector<8x128xf32>
    %cst_41 = arith.constant 1.000000e+00 : f32
    %118 = vector.broadcast %cst_41 : f32 to vector<8x128xf32>
    %119 = arith.addf %118, %117 : vector<8x128xf32>
    %120 = arith.divf %118, %119 : vector<8x128xf32>
    %121 = vector.extract_strided_slice %114 {offsets = [0, 128], sizes = [8, 128], strides = [1, 1]} : vector<8x512xf32> to vector<8x128xf32>
    %122 = arith.negf %121 : vector<8x128xf32>
    %123 = math.exp %122 : vector<8x128xf32>
    %cst_42 = arith.constant 1.000000e+00 : f32
    %124 = vector.broadcast %cst_42 : f32 to vector<8x128xf32>
    %125 = arith.addf %124, %123 : vector<8x128xf32>
    %126 = arith.divf %124, %125 : vector<8x128xf32>
    %127 = vector.extract_strided_slice %114 {offsets = [0, 256], sizes = [8, 128], strides = [1, 1]} : vector<8x512xf32> to vector<8x128xf32>
    %128 = math.tanh %127 : vector<8x128xf32>
    %129 = vector.extract_strided_slice %114 {offsets = [0, 384], sizes = [8, 128], strides = [1, 1]} : vector<8x512xf32> to vector<8x128xf32>
    %130 = arith.negf %129 : vector<8x128xf32>
    %131 = math.exp %130 : vector<8x128xf32>
    %cst_43 = arith.constant 1.000000e+00 : f32
    %132 = vector.broadcast %cst_43 : f32 to vector<8x128xf32>
    %133 = arith.addf %132, %131 : vector<8x128xf32>
    %134 = arith.divf %132, %133 : vector<8x128xf32>
    %135 = arith.mulf %126, %105 : vector<8x128xf32>
    %136 = arith.mulf %120, %128 : vector<8x128xf32>
    %137 = arith.addf %135, %136 : vector<8x128xf32>
    %138 = math.tanh %137 : vector<8x128xf32>
    %139 = arith.mulf %134, %138 : vector<8x128xf32>
    %c4_i32 = arith.constant 4 : i32
    %c0_44 = arith.constant 0 : index
    %c0_45 = arith.constant 0 : index
    %140 = vector.load %arg9[%c0_44, %c0_45] : memref<8x128xf32, #tpu.memory_space<vmem>>, vector<8x128xf32>
    tpu.vector_store %arg9[%c0_44, %c0_45], %139 {strides = array<i32>} : memref<8x128xf32, #tpu.memory_space<vmem>>, vector<8x128xf32>,
    %c0_46 = arith.constant 0 : index
    %c0_47 = arith.constant 0 : index
    %141 = vector.load %arg10[%c0_46, %c0_47] : memref<8x128xf32, #tpu.memory_space<vmem>>, vector<8x128xf32>
    tpu.vector_store %arg10[%c0_46, %c0_47], %137 {strides = array<i32>} : memref<8x128xf32, #tpu.memory_space<vmem>>, vector<8x128xf32>,
    %c1_i32_48 = arith.constant 1 : i32
    %142 = arith.cmpi eq, %arg1, %c1_i32_48 : i32
    %143 = arith.extui %142 : i1 to i32
    %c0_i32_49 = arith.constant 0 : i32
    %144 = arith.cmpi ne, %143, %c0_i32_49 : i32
    scf.if %144 {
      %c0_50 = arith.constant 0 : index
      %c0_51 = arith.constant 0 : index
      %145 = vector.load %arg9[%c0_50, %c0_51] : memref<8x128xf32, #tpu.memory_space<vmem>>, vector<8x128xf32>
      %c0_52 = arith.constant 0 : index
      %c0_53 = arith.constant 0 : index
      %146 = vector.load %arg14[%c0_52, %c0_53] : memref<128x128xf32, #tpu.memory_space<vmem>>, vector<128x128xf32>
      %cst_54 = arith.constant dense<0.000000e+00> : vector<8x128xf32>
      %147 = tpu.matmul %145, %146, %cst_54 {dimension_numbers = #tpu.dot_dimension_numbers<[1], [0], [0], [1], [0, 0, 1, 1], [], []>} : vector<8x128xf32>, vector<128x128xf32>, vector<8x128xf32> -> vector<8x128xf32>
      %c0_55 = arith.constant 0 : index
      %c0_56 = arith.constant 0 : index
      %148 = vector.load %arg7[%c0_55, %c0_56] : memref<1x128xf32, #tpu.memory_space<vmem>>, vector<1x128xf32>
      %149 = vector.broadcast %148 : vector<1x128xf32> to vector<8x128xf32>
      %150 = arith.addf %147, %149 : vector<8x128xf32>
      %c0_57 = arith.constant 0 : index
      %c0_58 = arith.constant 0 : index
      %151 = vector.load %arg8[%c0_57, %c0_58] : memref<8x128xf32, #tpu.memory_space<vmem>>, vector<8x128xf32>
      tpu.vector_store %arg8[%c0_57, %c0_58], %150 {strides = array<i32>} : memref<8x128xf32, #tpu.memory_space<vmem>>, vector<8x128xf32>,
    } else {
    }
    return
  }
  func.func @transform_0(%arg0: i32, %arg1: i32) -> (i32, i32) {
    %c2_i32 = arith.constant 2 : i32
    %0 = arith.muli %arg0, %c2_i32 : i32
    %1 = arith.addi %0, %arg1 : i32
    %c0_i32 = arith.constant 0 : i32
    %c0_i32_0 = arith.constant 0 : i32
    return %1, %c0_i32 : i32, i32
  }
  func.func @transform_3(%arg0: i32, %arg1: i32) -> (i32, i32) {
    %c0_i32 = arith.constant 0 : i32
    %c0_i32_0 = arith.constant 0 : i32
    %c0_i32_1 = arith.constant 0 : i32
    return %c0_i32, %c0_i32_0 : i32, i32
  }
  func.func @transform_5(%arg0: i32, %arg1: i32) -> (i32, i32) {
    %c0_i32 = arith.constant 0 : i32
    %c0_i32_0 = arith.constant 0 : i32
    %c0_i32_1 = arith.constant 0 : i32
    return %c0_i32, %c0_i32_0 : i32, i32
  }
  func.func @transform_6(%arg0: i32, %arg1: i32) -> (i32, i32) {
    %c0_i32 = arith.constant 0 : i32
    %c0_i32_0 = arith.constant 0 : i32
    return %arg0, %c0_i32 : i32, i32
  }
}

</mosaic_0001>

<bundles_post_ra>
// kernel: tpu_custom_call.1
= control target key start
LH: loop header
LB: loop body
LE: loop exit
PB: predicated region body
PF: predicated region fallthrough
CT: control target
= control target key end

     0   :  { %s2344_s0 = inlined_call_operand.hbm [shape: f32[64,128], index: 0, kind: input, shape index: {}]   ;;  %s2345_s1 = inlined_call_operand.hbm [shape: f32[128,512], index: 1, kind: input, shape index: {}]   ;;  %s2346_s2 = inlined_call_operand.hbm [shape: f32[128,512], index: 2, kind: input, shape index: {}]   ;;  %s2347_s3 = inlined_call_operand.hbm [shape: f32[1,512], index: 3, kind: input, shape index: {}]   ;;  %s2348_s4 = inlined_call_operand.hbm [shape: f32[128,128], index: 4, kind: input, shape index: {}]   ;;  %s2349_s5 = inlined_call_operand.vmem [shape: f32[1,128], index: 5, kind: input, shape index: {}]   ;;  %s2350_s6 = inlined_call_operand.hbm [shape: f32[8,128], index: 6, kind: output, shape index: {}]  }
   0x1   :  { %2380 = sst [smem:[#allocation67_spill]] %s2347_s3 }
   0x2   :  { %11 = vsyncpa [#allocation10], 0 }
   0x3   :  { %13 = vsyncpa [#allocation10 + $0x1], 0 }
   0x4   :  { %14 = vsyncpa [#allocation13], 0 }
   0x5   :  { %15 = vsyncpa [#allocation11], 0  ;;  %s1771_s21 = smov 0   ;;  %s1773_s22 = smov 0  }
   0x6   :  { %s1775_s23 = smov 0   ;;  %s1777_s24 = smov 0  }
   0x7   :  { %s1779_s25 = smov 0   ;;  %s1781_s26 = smov 0  }
   0x8 LB: > { %s2351_s27 = sadd.s32 4294967295, %s1726_s26   ;;  %s44_s28 = sadd.s32 1, %s1714_s23  ;;  %s1726_s26 = sphi %s1781_s26, %s21_s26   ;;  %s1722_s25 = sphi %s1779_s25, %s2469_s25   ;;  %s1718_s24 = sphi %s1777_s24, %s2468_s24   ;;  %s1714_s23 = sphi %s1775_s23, %s2467_s23   ;;  %s1710_s22 = sphi %s1773_s22, %s2466_s22   ;;  %s1706_s21 = sphi %s1771_s21, %s2465_s21  }
   0x9   : > { %p51_p0 = scmp.ne.s32.totalorder %s1714_s23, %s1710_s22  ;;  %p52_p1 = scmp.eq.s32.totalorder %s1726_s26, 0 }
   0xa   : > { %p57_p2 = scmp.ne.s32.totalorder %s1710_s22, %s1706_s21  ;;  %p1807_p3 = scmp.eq.s32.totalorder %s2351_s27, 0 }
   0xb   : > { %p1811_p4 = por %p52_p1, %p51_p0  ;;  %p1327_p5 = scmp.ge.s32.totalorder %s1726_s26, 1 }
   0xc   : > { %p1818_p6 = por %p1807_p3, %p57_p2  ;;  %p136_p7 = scmp.lt.s32.totalorder %s1726_s26, 3 }
   0xd   : > { %s2384_s3 = sld [smem:[#allocation67_spill]]  ;;  %s1728_s12 = smov [#allocation12]  }
   0xe   : > { %p1826_p8 = pnand %p1327_p5, %p136_p7  ;;  %s150_s13 = sshll.u32 %s1728_s12, 4  ;;  %s151_s13 = int_to_ptr.vmem [resolvable:$true] %s150_s13 }
   0xf   : > { %p1377_p10 = scmp.lt.s32.totalorder %s1726_s26, 2  ;;  %s30_s15 = sadd.s32 1, %s1722_s25 }
  0x10   : > { %p1368_p9 = pneg %p1826_p8  ;;  %p31_p13 = scmp.ge.s32.totalorder %s30_s15, 2 }
  0x11   : > { %p1837_p12 = pnand %p1377_p10, %p1811_p4  ;;  %s164_s16 = sand.u32 1, %s1714_s23  }
  0x12   : > { %p1369_p11 = pnand %p1368_p9, %p1807_p3  ;;  %s1357_s17 = sshll.u32 %s1722_s25, 5 }
  0x13   : > { %s148_s10 = sshll.u32 %s2384_s3, 4  ;;  %s2471_s15 = smov (%p31_p13, %s30_s15), 0  ;;  %s149_s10 = int_to_ptr.hbm [resolvable:$true] %s148_s10 }
  0x14   : > { %1371 = dma.hbm_to_vmem [thread:$0]  (!%p1369_p11), %s149_s10, 64, %s151_s13, [#allocation13]  }
  0x15   : > { %s1330_s18 = sshll.u32 %s164_s16, 5  ;;  %s41_s19 = ssub.s32 %s1722_s25, %s2471_s15 }
  0x16   : > { %p42_p0 = scmp.eq.s32.totalorder %s41_s19, 0  ;;  %s175_s30 = scalar_lea.hbm %s2344_s0, %s1357_s17 }
  0x17   : > { %s176_s8 = sshll.u32 %s175_s30, 4  ;;  %s168_s9 = scalar_lea.vmem [#allocation9], %s1330_s18  ;;  %s177_s8 = int_to_ptr.hbm [resolvable:$true] %s176_s8 }
  0x18   : > { %s178_s12 = sshll.u32 %s168_s9, 4  ;;  %s165_s10 = scalar_lea.sflag [#allocation10], %s164_s16  ;;  %s179_s12 = int_to_ptr.vmem [resolvable:$true] %s178_s12 }
  0x19   : > { %s1854_s27 = scalar_select %p42_p0, %s1714_s23, %s44_s28  }
  0x1a   : > { %s1729_s13 = smov 128   ;;  %s1730_s3 = smov 8  }
  0x1b   : > { %1375 = dma.hbm_to_vmem [thread:$0]  (!%p1837_p12), %s177_s8, 512, %s179_s12, %s165_s10, %s1729_s13, %s1729_s13, %s1730_s3  }
  0x1c   : > { %190 = sbr.rel (%p1826_p8) target bundleno = 976 (0x3d0), region = 32 }
  0x21   : > { %s192_s19 = sand.u32 1, %s1710_s22  }
  0x22   : > { %s1334_s17 = sshll.u32 %s192_s19, 5  ;;  %s193_s20 = scalar_lea.sflag [#allocation10], %s192_s19 }
  0x23   : > { %s1861_s18 = scalar_lea.vmem [#allocation9], %s1334_s17 }
  0x24   : > { %1687 = dma.done.wait (%p1818_p6), %s193_s20, 512  }
  0x25   : > { %1689 = vsyncadd (%p1818_p6), %s193_s20, 4294966784 }
  0x26   : > { %1691 = dma.done.wait (%p1807_p3), [#allocation13], 64  }
  0x27   : > { %1693 = vsyncadd (%p1807_p3), [#allocation13], 4294967232  ;;  %p1336_p1 = scmp.ne.s32.totalorder %s1718_s24, 0 }
  0x28   : > { %s236_s11 = sshll.u32 (!%p1336_p1), %s2345_s1, 4  ;;  %s1731_s14 = smov (!%p1336_p1), [#allocation5]   ;;  %s237_s11 = int_to_ptr.hbm [resolvable:$true] %s236_s11 }
  0x29   : > { %226 = sbr.rel (%p1336_p1) target bundleno = 55 (0x37), region = 44  ;;  %s238_s16 = sshll.u32 (!%p1336_p1), %s1731_s14, 4  ;;  %s239_s16 = int_to_ptr.vmem [resolvable:$true] %s238_s16 }
  0x2a   : > { %s250_s30 = sshll.u32 (!%p1336_p1), %s2346_s2, 4  ;;  %s1733_s29 = smov (!%p1336_p1), [#allocation6]   ;;  %s251_s30 = int_to_ptr.hbm [resolvable:$true] %s250_s30 }
  0x2b   : > { %241 = dma.hbm_to_vmem [thread:$0]  (!%p1336_p1), %s237_s11, 8192, %s239_s16, [#allocation8] }
  0x2c   : > { %s252_s8 = sshll.u32 (!%p1336_p1), %s1733_s29, 4  ;;  %s264_s10 = sshll.u32 (!%p1336_p1), %s2348_s4, 4  ;;  %s253_s8 = int_to_ptr.vmem [resolvable:$true] %s252_s8  ;;  %s265_s10 = int_to_ptr.hbm [resolvable:$true] %s264_s10 }
  0x2d   : > { %255 = dma.hbm_to_vmem [thread:$0]  (!%p1336_p1), %s251_s30, 8192, %s253_s8, [#allocation8 + $0x1] }
  0x2e   : > { %v1732_v0 = vmov 0.0   ;;  %s1734_s13 = smov [#allocation7]  }
  0x2f   : > { %227 = vst [vmem:[#allocation2] sm:$0xff] %v1732_v0  ;;  %s266_s19 = sshll.u32 %s1734_s13, 4  ;;  %s267_s19 = int_to_ptr.vmem [resolvable:$true] %s266_s19 }
  0x30   : > { %228 = vst [vmem:[#allocation3] sm:$0xff] %v1732_v0  ;;  %269 = dma.hbm_to_vmem [thread:$0]  %s265_s10, 2048, %s267_s19, [#allocation8 + $0x2] }
  0x31   : > { %1694 = dma.done.wait [#allocation8], 8192 }
  0x32   : > { %1695 = vsyncadd [#allocation8], 4294959104 }
  0x33   : > { %1696 = dma.done.wait [#allocation8 + $0x1], 8192 }
  0x34   : > { %1697 = vsyncadd [#allocation8 + $0x1], 4294959104 }
  0x35   : > { %1698 = dma.done.wait [#allocation8 + $0x2], 2048 }
  0x36   : > { %1699 = vsyncadd [#allocation8 + $0x2], 4294965248 }
  0x37 PF: > { %v343_v1 = vld [vmem:[#allocation5 + $0x1e0] sm:$0xff]  ;;  %v344_v2 = vld [vmem:[#allocation5 + $0x1e8] sm:$0xff]  ;;  %v345_v3 = vld [vmem:[#allocation5 + $0x1f0] sm:$0xff]  ;;  %p1349_p2 = scmp.ne.s32.totalorder %s1718_s24, 1 }
  0x38   : > { %357 = vmatpush.msra.mxu0 %v343_v1  ;;  %386 = vmatpush.msra.mxu1 %v344_v2  ;;  %v346_v4 = vld [vmem:[#allocation5 + $0x1f8] sm:$0xff]  ;;  %v339_v5 = vld [vmem:[#allocation5 + $0x1c0] sm:$0xff]  ;;  %v340_v6 = vld [vmem:[#allocation5 + $0x1c8] sm:$0xff] }
  0x39   : > { %415 = vmatpush.msra.mxu2 %v345_v3  ;;  %444 = vmatpush.msra.mxu3 %v346_v4  ;;  %v341_v7 = vld [vmem:[#allocation5 + $0x1d0] sm:$0xff]  ;;  %v342_v8 = vld [vmem:[#allocation5 + $0x1d8] sm:$0xff]  ;;  %v335_v9 = vld [vmem:[#allocation5 + $0x1a0] sm:$0xff] }
  0x3a   : > { %358 = vmatpush.msra.mxu0 %v339_v5  ;;  %387 = vmatpush.msra.mxu1 %v340_v6  ;;  %v336_v10 = vld [vmem:[#allocation5 + $0x1a8] sm:$0xff]  ;;  %v337_v11 = vld [vmem:[#allocation5 + $0x1b0] sm:$0xff]  ;;  %v338_v12 = vld [vmem:[#allocation5 + $0x1b8] sm:$0xff] }
  0x3b   : > { %416 = vmatpush.msra.mxu2 %v341_v7  ;;  %445 = vmatpush.msra.mxu3 %v342_v8  ;;  %v331_v13 = vld [vmem:[#allocation5 + $0x180] sm:$0xff]  ;;  %v332_v14 = vld [vmem:[#allocation5 + $0x188] sm:$0xff]  ;;  %v333_v15 = vld [vmem:[#allocation5 + $0x190] sm:$0xff] }
  0x3c   : > { %359 = vmatpush.msra.mxu0 %v335_v9  ;;  %388 = vmatpush.msra.mxu1 %v336_v10  ;;  %v334_v16 = vld [vmem:[#allocation5 + $0x198] sm:$0xff]  ;;  %v327_v17 = vld [vmem:[#allocation5 + $0x160] sm:$0xff]  ;;  %v328_v18 = vld [vmem:[#allocation5 + $0x168] sm:$0xff] }
  0x3d   : > { %417 = vmatpush.msra.mxu2 %v337_v11  ;;  %446 = vmatpush.msra.mxu3 %v338_v12  ;;  %v329_v19 = vld [vmem:[#allocation5 + $0x170] sm:$0xff]  ;;  %v330_v20 = vld [vmem:[#allocation5 + $0x178] sm:$0xff]  ;;  %v323_v21 = vld [vmem:[#allocation5 + $0x140] sm:$0xff] }
  0x3e   : > { %360 = vmatpush.msra.mxu0 %v331_v13  ;;  %389 = vmatpush.msra.mxu1 %v332_v14  ;;  %v324_v22 = vld [vmem:[#allocation5 + $0x148] sm:$0xff]  ;;  %v325_v23 = vld [vmem:[#allocation5 + $0x150] sm:$0xff]  ;;  %v326_v24 = vld [vmem:[#allocation5 + $0x158] sm:$0xff] }
  0x3f   : > { %418 = vmatpush.msra.mxu2 %v333_v15  ;;  %447 = vmatpush.msra.mxu3 %v334_v16  ;;  %v319_v25 = vld [vmem:[#allocation5 + $0x120] sm:$0xff]  ;;  %v320_v26 = vld [vmem:[#allocation5 + $0x128] sm:$0xff]  ;;  %v321_v27 = vld [vmem:[#allocation5 + $0x130] sm:$0xff] }
  0x40   : > { %361 = vmatpush.msra.mxu0 %v327_v17  ;;  %390 = vmatpush.msra.mxu1 %v328_v18  ;;  %v322_v28 = vld [vmem:[#allocation5 + $0x138] sm:$0xff]  ;;  %v315_v29 = vld [vmem:[#allocation5 + $0x100] sm:$0xff]  ;;  %v316_v30 = vld [vmem:[#allocation5 + $0x108] sm:$0xff] }
  0x41   : > { %419 = vmatpush.msra.mxu2 %v329_v19  ;;  %448 = vmatpush.msra.mxu3 %v330_v20  ;;  %v317_v31 = vld [vmem:[#allocation5 + $0x110] sm:$0xff]  ;;  %v318_v32 = vld [vmem:[#allocation5 + $0x118] sm:$0xff]  ;;  %v311_v33 = vld [vmem:[#allocation5 + $0xe0] sm:$0xff] }
  0x42   : > { %362 = vmatpush.msra.mxu0 %v323_v21  ;;  %391 = vmatpush.msra.mxu1 %v324_v22  ;;  %v312_v34 = vld [vmem:[#allocation5 + $0xe8] sm:$0xff]  ;;  %v313_v35 = vld [vmem:[#allocation5 + $0xf0] sm:$0xff]  ;;  %v314_v36 = vld [vmem:[#allocation5 + $0xf8] sm:$0xff] }
  0x43   : > { %420 = vmatpush.msra.mxu2 %v325_v23  ;;  %449 = vmatpush.msra.mxu3 %v326_v24  ;;  %v307_v37 = vld [vmem:[#allocation5 + $0xc0] sm:$0xff]  ;;  %v308_v38 = vld [vmem:[#allocation5 + $0xc8] sm:$0xff]  ;;  %v309_v39 = vld [vmem:[#allocation5 + $0xd0] sm:$0xff] }
  0x44   : > { %363 = vmatpush.msra.mxu0 %v319_v25  ;;  %392 = vmatpush.msra.mxu1 %v320_v26  ;;  %v310_v40 = vld [vmem:[#allocation5 + $0xd8] sm:$0xff]  ;;  %v303_v41 = vld [vmem:[#allocation5 + $0xa0] sm:$0xff]  ;;  %v304_v42 = vld [vmem:[#allocation5 + $0xa8] sm:$0xff] }
  0x45   : > { %421 = vmatpush.msra.mxu2 %v321_v27  ;;  %450 = vmatpush.msra.mxu3 %v322_v28  ;;  %v305_v43 = vld [vmem:[#allocation5 + $0xb0] sm:$0xff]  ;;  %v306_v44 = vld [vmem:[#allocation5 + $0xb8] sm:$0xff]  ;;  %v299_v45 = vld [vmem:[#allocation5 + $0x80] sm:$0xff] }
  0x46   : > { %364 = vmatpush.msra.mxu0 %v315_v29  ;;  %393 = vmatpush.msra.mxu1 %v316_v30  ;;  %v300_v46 = vld [vmem:[#allocation5 + $0x88] sm:$0xff]  ;;  %v301_v47 = vld [vmem:[#allocation5 + $0x90] sm:$0xff]  ;;  %v302_v48 = vld [vmem:[#allocation5 + $0x98] sm:$0xff] }
  0x47   : > { %422 = vmatpush.msra.mxu2 %v317_v31  ;;  %451 = vmatpush.msra.mxu3 %v318_v32  ;;  %v295_v49 = vld [vmem:[#allocation5 + $0x60] sm:$0xff]  ;;  %v296_v50 = vld [vmem:[#allocation5 + $0x68] sm:$0xff]  ;;  %v297_v51 = vld [vmem:[#allocation5 + $0x70] sm:$0xff] }
  0x48   : > { %365 = vmatpush.msra.mxu0 %v311_v33  ;;  %394 = vmatpush.msra.mxu1 %v312_v34  ;;  %v298_v52 = vld [vmem:[#allocation5 + $0x78] sm:$0xff]  ;;  %v291_v53 = vld [vmem:[#allocation5 + $0x40] sm:$0xff]  ;;  %v292_v54 = vld [vmem:[#allocation5 + $0x48] sm:$0xff] }
  0x49   : > { %423 = vmatpush.msra.mxu2 %v313_v35  ;;  %452 = vmatpush.msra.mxu3 %v314_v36  ;;  %v293_v55 = vld [vmem:[#allocation5 + $0x50] sm:$0xff]  ;;  %v294_v56 = vld [vmem:[#allocation5 + $0x58] sm:$0xff]  ;;  %v287_v57 = vld [vmem:[#allocation5 + $0x20] sm:$0xff] }
  0x4a   : > { %366 = vmatpush.msra.mxu0 %v307_v37  ;;  %395 = vmatpush.msra.mxu1 %v308_v38  ;;  %v288_v58 = vld [vmem:[#allocation5 + $0x28] sm:$0xff]  ;;  %v289_v59 = vld [vmem:[#allocation5 + $0x30] sm:$0xff]  ;;  %v290_v60 = vld [vmem:[#allocation5 + $0x38] sm:$0xff] }
  0x4b   : > { %424 = vmatpush.msra.mxu2 %v309_v39  ;;  %453 = vmatpush.msra.mxu3 %v310_v40  ;;  %v283_v61 = vld [vmem:[#allocation5] sm:$0xff]  ;;  %v284_v62 = vld [vmem:[#allocation5 + $0x8] sm:$0xff]  ;;  %v285_v63 = vld [vmem:[#allocation5 + $0x10] sm:$0xff] }
  0x4c   : > { %367 = vmatpush.msra.mxu0 %v303_v41  ;;  %396 = vmatpush.msra.mxu1 %v304_v42  ;;  %v286_v0 = vld [vmem:[#allocation5 + $0x18] sm:$0xff]  ;;  %v279_v1 = vld [vmem:[%s1861_s18] sm:$0xff]  ;;  %v1884_v3 = vld [vmem:[#allocation6 + $0x1e8] sm:$0xff] }
  0x4d   : > { %425 = vmatpush.msra.mxu2 %v305_v43  ;;  %454 = vmatpush.msra.mxu3 %v306_v44  ;;  %v1882_v2 = vld [vmem:[#allocation6 + $0x1e0] sm:$0xff]  ;;  %v1886_v4 = vld [vmem:[#allocation6 + $0x1f0] sm:$0xff]  ;;  %v1888_v5 = vld [vmem:[#allocation6 + $0x1f8] sm:$0xff] }
  0x4e   : > { %368 = vmatpush.msra.mxu0 %v299_v45  ;;  %397 = vmatpush.msra.mxu1 %v300_v46  ;;  %v1890_v6 = vld [vmem:[#allocation6 + $0x1c0] sm:$0xff]  ;;  %v1892_v7 = vld [vmem:[#allocation6 + $0x1c8] sm:$0xff]  ;;  %v1896_v8 = vld [vmem:[#allocation6 + $0x1d0] sm:$0xff] }
  0x4f   : > { %426 = vmatpush.msra.mxu2 %v301_v47  ;;  %455 = vmatpush.msra.mxu3 %v302_v48  ;;  %v1898_v9 = vld [vmem:[#allocation6 + $0x1d8] sm:$0xff]  ;;  %v1902_v10 = vld [vmem:[#allocation6 + $0x1a0] sm:$0xff]  ;;  %v1904_v11 = vld [vmem:[#allocation6 + $0x1a8] sm:$0xff] }
  0x50   : > { %369 = vmatpush.msra.mxu0 %v295_v49  ;;  %398 = vmatpush.msra.mxu1 %v296_v50  ;;  %v1908_v12 = vld [vmem:[#allocation6 + $0x1b0] sm:$0xff]  ;;  %v1910_v13 = vld [vmem:[#allocation6 + $0x1b8] sm:$0xff]  ;;  %v1914_v14 = vld [vmem:[#allocation6 + $0x180] sm:$0xff] }
  0x51   : > { %427 = vmatpush.msra.mxu2 %v297_v51  ;;  %456 = vmatpush.msra.mxu3 %v298_v52  ;;  %v1916_v15 = vld [vmem:[#allocation6 + $0x188] sm:$0xff]  ;;  %v1920_v16 = vld [vmem:[#allocation6 + $0x190] sm:$0xff]  ;;  %v1922_v17 = vld [vmem:[#allocation6 + $0x198] sm:$0xff] }
  0x52   : > { %370 = vmatpush.msra.mxu0 %v291_v53  ;;  %399 = vmatpush.msra.mxu1 %v292_v54  ;;  %v280_v18 = vld [vmem:[%s1861_s18 + $0x8] sm:$0xff]  ;;  %v1931_v19 = vld [vmem:[#allocation6 + $0x160] sm:$0xff]  ;;  %v1935_v21 = vld [vmem:[#allocation6 + $0x170] sm:$0xff] }
  0x53   : > { %428 = vmatpush.msra.mxu2 %v293_v55  ;;  %457 = vmatpush.msra.mxu3 %v294_v56  ;;  %v1933_v20 = vld [vmem:[#allocation6 + $0x168] sm:$0xff]  ;;  %v1937_v22 = vld [vmem:[#allocation6 + $0x178] sm:$0xff]  ;;  %v1939_v23 = vld [vmem:[#allocation6 + $0x140] sm:$0xff] }
  0x54   : > { %371 = vmatpush.msra.mxu0 %v287_v57  ;;  %400 = vmatpush.msra.mxu1 %v288_v58  ;;  %v1941_v24 = vld [vmem:[#allocation6 + $0x148] sm:$0xff]  ;;  %v1945_v25 = vld [vmem:[#allocation6 + $0x150] sm:$0xff]  ;;  %v1947_v26 = vld [vmem:[#allocation6 + $0x158] sm:$0xff] }
  0x55   : > { %429 = vmatpush.msra.mxu2 %v289_v59  ;;  %458 = vmatpush.msra.mxu3 %v290_v60  ;;  %v1951_v27 = vld [vmem:[#allocation6 + $0x120] sm:$0xff]  ;;  %v1953_v28 = vld [vmem:[#allocation6 + $0x128] sm:$0xff]  ;;  %v1957_v29 = vld [vmem:[#allocation6 + $0x130] sm:$0xff] }
  0x56   : > { %372 = vmatpush.msra.mxu0 %v283_v61  ;;  %401 = vmatpush.msra.mxu1 %v284_v62  ;;  %v1959_v30 = vld [vmem:[#allocation6 + $0x138] sm:$0xff]  ;;  %v1963_v31 = vld [vmem:[#allocation6 + $0x100] sm:$0xff]  ;;  %v1965_v32 = vld [vmem:[#allocation6 + $0x108] sm:$0xff] }
  0x57   : > { %430 = vmatpush.msra.mxu2 %v285_v63  ;;  %459 = vmatpush.msra.mxu3 %v286_v0  ;;  %v1969_v33 = vld [vmem:[#allocation6 + $0x110] sm:$0xff]  ;;  %v1971_v34 = vld [vmem:[#allocation6 + $0x118] sm:$0xff]  ;;  %v1980_v36 = vld [vmem:[#allocation6 + $0xe0] sm:$0xff] }
  0x58   : > { %373 = vmatmul.f32.vlgmr.msra.gmra.mxu0 %v279_v1  ;;  %402 = vmatmul.f32.vlgmr.msra.gmra.mxu1 %v279_v1  ;;  %v281_v35 = vld [vmem:[%s1861_s18 + $0x10] sm:$0xff]  ;;  %v1982_v37 = vld [vmem:[#allocation6 + $0xe8] sm:$0xff]  ;;  %v1986_v39 = vld [vmem:[#allocation6 + $0xf8] sm:$0xff] }
  0x59   : > { %431 = vmatmul.f32.vlgmr.msra.gmra.mxu2 %v279_v1  ;;  %460 = vmatmul.f32.vlgmr.msra.gmra.mxu3 %v279_v1  ;;  %v1984_v38 = vld [vmem:[#allocation6 + $0xf0] sm:$0xff]  ;;  %v1988_v40 = vld [vmem:[#allocation6 + $0xc0] sm:$0xff]  ;;  %v1990_v41 = vld [vmem:[#allocation6 + $0xc8] sm:$0xff] }
  0x5a   : > { %562 = vmatpush.msrb.mxu0 %v1882_v2  ;;  %582 = vmatpush.msrb.mxu1 %v1884_v3  ;;  %v1994_v42 = vld [vmem:[#allocation6 + $0xd0] sm:$0xff]  ;;  %v1996_v43 = vld [vmem:[#allocation6 + $0xd8] sm:$0xff]  ;;  %v2000_v44 = vld [vmem:[#allocation6 + $0xa0] sm:$0xff] }
  0x5b   : > { %602 = vmatpush.msrb.mxu2 %v1886_v4  ;;  %622 = vmatpush.msrb.mxu3 %v1888_v5  ;;  %2387 = vst [vmem:[#allocation29_spill] sm:$0xff] %v1994_v42  ;;  %v2002_v45 = vld [vmem:[#allocation6 + $0xa8] sm:$0xff]  ;;  %v2006_v46 = vld [vmem:[#allocation6 + $0xb0] sm:$0xff]  ;;  %v2008_v47 = vld [vmem:[#allocation6 + $0xb8] sm:$0xff] }
  0x5c   : > { %563 = vmatpush.msrb.mxu0 %v1890_v6  ;;  %583 = vmatpush.msrb.mxu1 %v1892_v7  ;;  %2388 = vst [vmem:[#allocation30_spill] sm:$0xff] %v1996_v43  ;;  %v2012_v48 = vld [vmem:[#allocation6 + $0x80] sm:$0xff]  ;;  %v2014_v49 = vld [vmem:[#allocation6 + $0x88] sm:$0xff]  ;;  %v2018_v50 = vld [vmem:[#allocation6 + $0x90] sm:$0xff] }
  0x5d   : > { %603 = vmatpush.msrb.mxu2 %v1896_v8  ;;  %623 = vmatpush.msrb.mxu3 %v1898_v9  ;;  %2389 = vst [vmem:[#allocation31_spill] sm:$0xff] %v2000_v44  ;;  %v2020_v51 = vld [vmem:[#allocation6 + $0x98] sm:$0xff]  ;;  %v2029_v53 = vld [vmem:[#allocation6 + $0x60] sm:$0xff]  ;;  %v2031_v54 = vld [vmem:[#allocation6 + $0x68] sm:$0xff] }
  0x5e   : > { %564 = vmatpush.msrb.mxu0 %v1902_v10  ;;  %584 = vmatpush.msrb.mxu1 %v1904_v11  ;;  %2390 = vst [vmem:[#allocation32_spill] sm:$0xff] %v2002_v45  ;;  %v282_v52 = vld [vmem:[%s1861_s18 + $0x18] sm:$0xff]  ;;  %v2033_v55 = vld [vmem:[#allocation6 + $0x70] sm:$0xff]  ;;  %v2037_v57 = vld [vmem:[#allocation6 + $0x40] sm:$0xff] }
  0x5f   : > { %604 = vmatpush.msrb.mxu2 %v1908_v12  ;;  %624 = vmatpush.msrb.mxu3 %v1910_v13  ;;  %2391 = vst [vmem:[#allocation33_spill] sm:$0xff] %v2006_v46  ;;  %v2035_v56 = vld [vmem:[#allocation6 + $0x78] sm:$0xff]  ;;  %v2039_v58 = vld [vmem:[#allocation6 + $0x48] sm:$0xff]  ;;  %v2043_v59 = vld [vmem:[#allocation6 + $0x50] sm:$0xff] }
  0x60   : > { %565 = vmatpush.msrb.mxu0 %v1914_v14  ;;  %585 = vmatpush.msrb.mxu1 %v1916_v15  ;;  %2392 = vst [vmem:[#allocation34_spill] sm:$0xff] %v2008_v47  ;;  %v2045_v60 = vld [vmem:[#allocation6 + $0x58] sm:$0xff]  ;;  %v2049_v61 = vld [vmem:[#allocation6 + $0x20] sm:$0xff]  ;;  %v2051_v62 = vld [vmem:[#allocation6 + $0x28] sm:$0xff] }
  0x61   : > { %605 = vmatpush.msrb.mxu2 %v1920_v16  ;;  %625 = vmatpush.msrb.mxu3 %v1922_v17  ;;  %2393 = vst [vmem:[#allocation35_spill] sm:$0xff] %v2012_v48  ;;  %v2055_v63 = vld [vmem:[#allocation6 + $0x30] sm:$0xff]  ;;  %v2057_v0 = vld [vmem:[#allocation6 + $0x38] sm:$0xff]  ;;  %v2061_v1 = vld [vmem:[#allocation6] sm:$0xff] }
  0x62   : > { %376 = vmatmul.f32.gmra.mxu0 %v280_v18  ;;  %405 = vmatmul.f32.gmra.mxu1 %v280_v18  ;;  %2394 = vst [vmem:[#allocation36_spill] sm:$0xff] %v2014_v49 }
  0x63   : > { %434 = vmatmul.f32.gmra.mxu2 %v280_v18  ;;  %463 = vmatmul.f32.gmra.mxu3 %v280_v18  ;;  %2395 = vst [vmem:[#allocation37_spill] sm:$0xff] %v2018_v50  ;;  %v2063_v18 = vld [vmem:[#allocation6 + $0x8] sm:$0xff] }
  0x64   : > { %566 = vmatpush.msrb.mxu0 %v1931_v19  ;;  %586 = vmatpush.msrb.mxu1 %v1933_v20  ;;  %2396 = vst [vmem:[#allocation38_spill] sm:$0xff] %v2020_v51 }
  0x65   : > { %606 = vmatpush.msrb.mxu2 %v1935_v21  ;;  %626 = vmatpush.msrb.mxu3 %v1937_v22  ;;  %2397 = vst [vmem:[#allocation39_spill] sm:$0xff] %v2029_v53 }
  0x66   : > { %567 = vmatpush.msrb.mxu0 %v1939_v23  ;;  %587 = vmatpush.msrb.mxu1 %v1941_v24  ;;  %2398 = vst [vmem:[#allocation40_spill] sm:$0xff] %v2031_v54 }
  0x67   : > { %607 = vmatpush.msrb.mxu2 %v1945_v25  ;;  %627 = vmatpush.msrb.mxu3 %v1947_v26  ;;  %2399 = vst [vmem:[#allocation41_spill] sm:$0xff] %v2033_v55 }
  0x68   : > { %568 = vmatpush.msrb.mxu0 %v1951_v27  ;;  %588 = vmatpush.msrb.mxu1 %v1953_v28  ;;  %2400 = vst [vmem:[#allocation42_spill] sm:$0xff] %v2035_v56 }
  0x69   : > { %608 = vmatpush.msrb.mxu2 %v1957_v29  ;;  %628 = vmatpush.msrb.mxu3 %v1959_v30  ;;  %2401 = vst [vmem:[#allocation43_spill] sm:$0xff] %v2037_v57 }
  0x6a   : > { %569 = vmatpush.msrb.mxu0 %v1963_v31  ;;  %589 = vmatpush.msrb.mxu1 %v1965_v32  ;;  %2402 = vst [vmem:[#allocation44_spill] sm:$0xff] %v2039_v58 }
  0x6b   : > { %609 = vmatpush.msrb.mxu2 %v1969_v33  ;;  %629 = vmatpush.msrb.mxu3 %v1971_v34  ;;  %2403 = vst [vmem:[#allocation45_spill] sm:$0xff] %v2043_v59 }
  0x6c   : > { %379 = vmatmul.f32.gmra.mxu0 %v281_v35  ;;  %408 = vmatmul.f32.gmra.mxu1 %v281_v35  ;;  %2404 = vst [vmem:[#allocation46_spill] sm:$0xff] %v2045_v60 }
  0x6d   : > { %437 = vmatmul.f32.gmra.mxu2 %v281_v35  ;;  %466 = vmatmul.f32.gmra.mxu3 %v281_v35  ;;  %2405 = vst [vmem:[#allocation47_spill] sm:$0xff] %v2049_v61  ;;  %v2067_v35 = vld [vmem:[#allocation6 + $0x10] sm:$0xff] }
  0x6e   : > { %570 = vmatpush.msrb.mxu0 %v1980_v36  ;;  %590 = vmatpush.msrb.mxu1 %v1982_v37  ;;  %2406 = vst [vmem:[#allocation48_spill] sm:$0xff] %v2051_v62 }
  0x6f   : > { %610 = vmatpush.msrb.mxu2 %v1984_v38  ;;  %630 = vmatpush.msrb.mxu3 %v1986_v39  ;;  %2407 = vst [vmem:[#allocation49_spill] sm:$0xff] %v2055_v63 }
  0x70   : > { %571 = vmatpush.msrb.mxu0 %v1988_v40  ;;  %591 = vmatpush.msrb.mxu1 %v1990_v41  ;;  %2408 = vst [vmem:[#allocation50_spill] sm:$0xff] %v2057_v0 }
  0x71   : > { %611 = vmatpush.msrb.mxu2 %v1994_v42  ;;  %631 = vmatpush.msrb.mxu3 %v1996_v43  ;;  %2409 = vst [vmem:[#allocation51_spill] sm:$0xff] %v2061_v1 }
  0x72   : > { %572 = vmatpush.msrb.mxu0 %v2000_v44  ;;  %592 = vmatpush.msrb.mxu1 %v2002_v45  ;;  %2410 = vst [vmem:[#allocation52_spill] sm:$0xff] %v2063_v18 }
  0x73   : > { %612 = vmatpush.msrb.mxu2 %v2006_v46  ;;  %632 = vmatpush.msrb.mxu3 %v2008_v47  ;;  %2411 = vst [vmem:[#allocation53_spill] sm:$0xff] %v2067_v35 }
  0x74   : > { %573 = vmatpush.msrb.mxu0 %v2012_v48  ;;  %593 = vmatpush.msrb.mxu1 %v2014_v49 }
  0x75   : > { %613 = vmatpush.msrb.mxu2 %v2018_v50  ;;  %633 = vmatpush.msrb.mxu3 %v2020_v51 }
  0x76   : > { %382 = vmatmul.f32.gmra.mxu0 %v282_v52  ;;  %411 = vmatmul.f32.gmra.mxu1 %v282_v52 }
  0x77   : > { %440 = vmatmul.f32.gmra.mxu2 %v282_v52  ;;  %469 = vmatmul.f32.gmra.mxu3 %v282_v52  ;;  %v2069_v52 = vld [vmem:[#allocation6 + $0x18] sm:$0xff] }
  0x78   : > { %574 = vmatpush.msrb.mxu0 %v2029_v53  ;;  %594 = vmatpush.msrb.mxu1 %v2031_v54  ;;  %2412 = vst [vmem:[#allocation54_spill] sm:$0xff] %v2069_v52 }
  0x79   : > { %614 = vmatpush.msrb.mxu2 %v2033_v55  ;;  %634 = vmatpush.msrb.mxu3 %v2035_v56 }
  0x7a   : > { %575 = vmatpush.msrb.mxu0 %v2037_v57  ;;  %595 = vmatpush.msrb.mxu1 %v2039_v58  ;;  %v489_v58 = vld [vmem:[#allocation2] sm:$0xff] }
  0x7b   : > { %615 = vmatpush.msrb.mxu2 %v2043_v59  ;;  %635 = vmatpush.msrb.mxu3 %v2045_v60 }
  0x7c   : > { %576 = vmatpush.msrb.mxu0 %v2049_v61  ;;  %596 = vmatpush.msrb.mxu1 %v2051_v62 }
  0x7d   : > { %616 = vmatpush.msrb.mxu2 %v2055_v63  ;;  %636 = vmatpush.msrb.mxu3 %v2057_v0 }
  0x7e   : > { %577 = vmatpush.msrb.mxu0 %v2061_v1  ;;  %597 = vmatpush.msrb.mxu1 %v2063_v18 }
  0x7f   : > { %617 = vmatpush.msrb.mxu2 %v2067_v35  ;;  %637 = vmatpush.msrb.mxu3 %v2069_v52 }
  0x80   : > { %578 = vmatmul.f32.vlgmr.msrb.gmra.mxu0 %v489_v58  ;;  %598 = vmatmul.f32.vlgmr.msrb.gmra.mxu1 %v489_v58 }
  0x81   : > { %618 = vmatmul.f32.vlgmr.msrb.gmra.mxu2 %v489_v58  ;;  %638 = vmatmul.f32.vlgmr.msrb.gmra.mxu3 %v489_v58  ;;  %v2413_v58 = vld [vmem:[#allocation44_spill] sm:$0xff] }
  0x82   : > { %716 = vmatpush.msra.mxu0 %v1882_v2  ;;  %736 = vmatpush.msra.mxu1 %v1884_v3 }
  0x83   : > { %756 = vmatpush.msra.mxu2 %v1886_v4  ;;  %776 = vmatpush.msra.mxu3 %v1888_v5 }
  0x84   : > { %717 = vmatpush.msra.mxu0 %v1890_v6  ;;  %737 = vmatpush.msra.mxu1 %v1892_v7 }
  0x85   : > { %757 = vmatpush.msra.mxu2 %v1896_v8  ;;  %777 = vmatpush.msra.mxu3 %v1898_v9 }
  0x86   : > { %718 = vmatpush.msra.mxu0 %v1902_v10  ;;  %738 = vmatpush.msra.mxu1 %v1904_v11 }
  0x87   : > { %758 = vmatpush.msra.mxu2 %v1908_v12  ;;  %778 = vmatpush.msra.mxu3 %v1910_v13 }
  0x88   : > { %719 = vmatpush.msra.mxu0 %v1914_v14  ;;  %739 = vmatpush.msra.mxu1 %v1916_v15 }
  0x89   : > { %759 = vmatpush.msra.mxu2 %v1920_v16  ;;  %779 = vmatpush.msra.mxu3 %v1922_v17 }
  0x8a   : > { %720 = vmatpush.msra.mxu0 %v1931_v19  ;;  %740 = vmatpush.msra.mxu1 %v1933_v20 }
  0x8b   : > { %760 = vmatpush.msra.mxu2 %v1935_v21  ;;  %780 = vmatpush.msra.mxu3 %v1937_v22 }
  0x8c   : > { %721 = vmatpush.msra.mxu0 %v1939_v23  ;;  %741 = vmatpush.msra.mxu1 %v1941_v24 }
  0x8d   : > { %761 = vmatpush.msra.mxu2 %v1945_v25  ;;  %781 = vmatpush.msra.mxu3 %v1947_v26 }
  0x8e   : > { %722 = vmatpush.msra.mxu0 %v1951_v27  ;;  %742 = vmatpush.msra.mxu1 %v1953_v28 }
  0x8f   : > { %762 = vmatpush.msra.mxu2 %v1957_v29  ;;  %782 = vmatpush.msra.mxu3 %v1959_v30 }
  0x90   : > { %723 = vmatpush.msra.mxu0 %v1963_v31  ;;  %743 = vmatpush.msra.mxu1 %v1965_v32 }
  0x91   : > { %763 = vmatpush.msra.mxu2 %v1969_v33  ;;  %783 = vmatpush.msra.mxu3 %v1971_v34 }
  0x92   : > { %724 = vmatpush.msra.mxu0 %v1980_v36  ;;  %744 = vmatpush.msra.mxu1 %v1982_v37 }
  0x93   : > { %764 = vmatpush.msra.mxu2 %v1984_v38  ;;  %784 = vmatpush.msra.mxu3 %v1986_v39 }
  0x94   : > { %725 = vmatpush.msra.mxu0 %v1988_v40  ;;  %745 = vmatpush.msra.mxu1 %v1990_v41 }
  0x95   : > { %765 = vmatpush.msra.mxu2 %v1994_v42  ;;  %785 = vmatpush.msra.mxu3 %v1996_v43 }
  0x96   : > { %726 = vmatpush.msra.mxu0 %v2000_v44  ;;  %746 = vmatpush.msra.mxu1 %v2002_v45 }
  0x97   : > { %766 = vmatpush.msra.mxu2 %v2006_v46  ;;  %786 = vmatpush.msra.mxu3 %v2008_v47 }
  0x98   : > { %727 = vmatpush.msra.mxu0 %v2012_v48  ;;  %747 = vmatpush.msra.mxu1 %v2014_v49 }
  0x99   : > { %767 = vmatpush.msra.mxu2 %v2018_v50  ;;  %787 = vmatpush.msra.mxu3 %v2020_v51 }
  0x9a   : > { %728 = vmatpush.msra.mxu0 %v2029_v53  ;;  %748 = vmatpush.msra.mxu1 %v2031_v54 }
  0x9b   : > { %768 = vmatpush.msra.mxu2 %v2033_v55  ;;  %788 = vmatpush.msra.mxu3 %v2035_v56 }
  0x9c   : > { %729 = vmatpush.msra.mxu0 %v2037_v57  ;;  %749 = vmatpush.msra.mxu1 %v2413_v58 }
  0x9d   : > { %769 = vmatpush.msra.mxu2 %v2043_v59  ;;  %789 = vmatpush.msra.mxu3 %v2045_v60 }
  0x9e   : > { %730 = vmatpush.msra.mxu0 %v2049_v61  ;;  %750 = vmatpush.msra.mxu1 %v2051_v62 }
  0x9f   : > { %770 = vmatpush.msra.mxu2 %v2055_v63  ;;  %790 = vmatpush.msra.mxu3 %v2057_v0 }
  0xa0   : > { %731 = vmatpush.msra.mxu0 %v2061_v1  ;;  %751 = vmatpush.msra.mxu1 %v2063_v18 }
  0xa1   : > { %771 = vmatpush.msra.mxu2 %v2067_v35  ;;  %791 = vmatpush.msra.mxu3 %v2069_v52 }
  0xa2   : > { %870 = vmatpush.msrb.mxu0 %v1882_v2  ;;  %890 = vmatpush.msrb.mxu1 %v1884_v3 }
  0xa3   : > { %910 = vmatpush.msrb.mxu2 %v1886_v4  ;;  %930 = vmatpush.msrb.mxu3 %v1888_v5 }
  0xa4   : > { %871 = vmatpush.msrb.mxu0 %v1890_v6  ;;  %891 = vmatpush.msrb.mxu1 %v1892_v7 }
  0xa5   : > { %911 = vmatpush.msrb.mxu2 %v1896_v8  ;;  %931 = vmatpush.msrb.mxu3 %v1898_v9 }
  0xa6   : > { %872 = vmatpush.msrb.mxu0 %v1902_v10  ;;  %892 = vmatpush.msrb.mxu1 %v1904_v11 }
  0xa7   : > { %912 = vmatpush.msrb.mxu2 %v1908_v12  ;;  %932 = vmatpush.msrb.mxu3 %v1910_v13 }
  0xa8   : > { %873 = vmatpush.msrb.mxu0 %v1914_v14  ;;  %893 = vmatpush.msrb.mxu1 %v1916_v15 }
  0xa9   : > { %913 = vmatpush.msrb.mxu2 %v1920_v16  ;;  %933 = vmatpush.msrb.mxu3 %v1922_v17 }
  0xaa   : > { %874 = vmatpush.msrb.mxu0 %v1931_v19  ;;  %894 = vmatpush.msrb.mxu1 %v1933_v20 }
  0xab   : > { %914 = vmatpush.msrb.mxu2 %v1935_v21  ;;  %934 = vmatpush.msrb.mxu3 %v1937_v22 }
  0xac   : > { %875 = vmatpush.msrb.mxu0 %v1939_v23  ;;  %895 = vmatpush.msrb.mxu1 %v1941_v24 }
  0xad   : > { %915 = vmatpush.msrb.mxu2 %v1945_v25  ;;  %935 = vmatpush.msrb.mxu3 %v1947_v26 }
  0xae   : > { %876 = vmatpush.msrb.mxu0 %v1951_v27  ;;  %896 = vmatpush.msrb.mxu1 %v1953_v28 }
  0xaf   : > { %916 = vmatpush.msrb.mxu2 %v1957_v29  ;;  %936 = vmatpush.msrb.mxu3 %v1959_v30 }
  0xb0   : > { %877 = vmatpush.msrb.mxu0 %v1963_v31  ;;  %897 = vmatpush.msrb.mxu1 %v1965_v32 }
  0xb1   : > { %917 = vmatpush.msrb.mxu2 %v1969_v33  ;;  %937 = vmatpush.msrb.mxu3 %v1971_v34 }
  0xb2   : > { %878 = vmatpush.msrb.mxu0 %v1980_v36  ;;  %898 = vmatpush.msrb.mxu1 %v1982_v37 }
  0xb3   : > { %918 = vmatpush.msrb.mxu2 %v1984_v38  ;;  %938 = vmatpush.msrb.mxu3 %v1986_v39 }
  0xb4   : > { %879 = vmatpush.msrb.mxu0 %v1988_v40  ;;  %899 = vmatpush.msrb.mxu1 %v1990_v41 }
  0xb5   : > { %919 = vmatpush.msrb.mxu2 %v1994_v42  ;;  %939 = vmatpush.msrb.mxu3 %v1996_v43 }
  0xb6   : > { %880 = vmatpush.msrb.mxu0 %v2000_v44  ;;  %900 = vmatpush.msrb.mxu1 %v2002_v45 }
  0xb7   : > { %920 = vmatpush.msrb.mxu2 %v2006_v46  ;;  %940 = vmatpush.msrb.mxu3 %v2008_v47 }
  0xb8   : > { %881 = vmatpush.msrb.mxu0 %v2012_v48  ;;  %901 = vmatpush.msrb.mxu1 %v2014_v49 }
  0xb9   : > { %921 = vmatpush.msrb.mxu2 %v2018_v50  ;;  %941 = vmatpush.msrb.mxu3 %v2020_v51 }
  0xba   : > { %882 = vmatpush.msrb.mxu0 %v2029_v53  ;;  %902 = vmatpush.msrb.mxu1 %v2031_v54 }
  0xbb   : > { %922 = vmatpush.msrb.mxu2 %v2033_v55  ;;  %942 = vmatpush.msrb.mxu3 %v2035_v56 }
  0xbc   : > { %883 = vmatpush.msrb.mxu0 %v2037_v57  ;;  %903 = vmatpush.msrb.mxu1 %v2413_v58  ;;  %v347_v57 = vld [vmem:[#allocation12] sm:$0xf] }
  0xbd   : > { %923 = vmatpush.msrb.mxu2 %v2043_v59  ;;  %943 = vmatpush.msrb.mxu3 %v2045_v60  ;;  %v350_v55 = vperm.slane %v347_v57, 1  ;;  %v352_v53 = vperm.slane %v347_v57, 3 }
  0xbe   : > { %884 = vmatpush.msrb.mxu0 %v2049_v61  ;;  %904 = vmatpush.msrb.mxu1 %v2051_v62  ;;  %v349_v61 = vperm.slane %v347_v57, 0 }
  0xbf   : > { %924 = vmatpush.msrb.mxu2 %v2055_v63  ;;  %944 = vmatpush.msrb.mxu3 %v2057_v0 }
  0xc0   : > { %885 = vmatpush.msrb.mxu0 %v2061_v1  ;;  %905 = vmatpush.msrb.mxu1 %v2063_v18  ;;  %v351_v1 = vperm.slane %v347_v57, 2 }
  0xc1   : > { %925 = vmatpush.msrb.mxu2 %v2067_v35  ;;  %945 = vmatpush.msrb.mxu3 %v2069_v52 }
  0xd5   : > { %v374_v58 = vpop.f32.mrf.mxu0  ;;  %v403_v59 = vpop.f32.mrf.mxu1 }
  0xdc   : > { %v432_v60 = vpop.f32.mrf.mxu2  ;;  %v461_v56 = vpop.f32.mrf.mxu3 }
  0xdd   : > { %v462_v43 = vadd.f32 %v461_v56, %v352_v53 }
  0xdf   : > { %v377_v62 = vpop.f32.mrf.mxu0  ;;  %v406_v54 = vpop.f32.mrf.mxu1 }
  0xe0   : > { %v2205_v63 = vadd.f32 %v377_v62, %v349_v61  ;;  %v2207_v0 = vadd.f32 %v406_v54, %v350_v55 }
  0xe2   : > { %2414 = vst [vmem:[#allocation55_spill] sm:$0xff] %v2205_v63 }
  0xe3   : > { %2415 = vst [vmem:[#allocation56_spill] sm:$0xff] %v2207_v0 }
  0xe6   : > { %v435_v18 = vpop.f32.mrf.mxu2  ;;  %v464_v51 = vpop.f32.mrf.mxu3 }
  0xe7   : > { %v2209_v35 = vadd.f32 %v435_v18, %v351_v1  ;;  %v2211_v52 = vadd.f32 %v464_v51, %v352_v53 }
  0xe9   : > { %2416 = vst [vmem:[#allocation57_spill] sm:$0xff] %v2209_v35  ;;  %v380_v50 = vpop.f32.mrf.mxu0  ;;  %v409_v49 = vpop.f32.mrf.mxu1 }
  0xea   : > { %2417 = vst [vmem:[#allocation58_spill] sm:$0xff] %v2211_v52  ;;  %v2213_v48 = vadd.f32 %v380_v50, %v349_v61  ;;  %v2215_v47 = vadd.f32 %v409_v49, %v350_v55  ;;  %v375_v49 = vadd.f32 %v374_v58, %v349_v61 }
  0xec   : > { %2418 = vst [vmem:[#allocation59_spill] sm:$0xff] %v2213_v48 }
  0xed   : > { %2419 = vst [vmem:[#allocation60_spill] sm:$0xff] %v2215_v47  ;;  %v404_v47 = vadd.f32 %v403_v59, %v350_v55 }
  0xf0   : > { %v438_v46 = vpop.f32.mrf.mxu2  ;;  %v467_v45 = vpop.f32.mrf.mxu3 }
  0xf1   : > { %v2217_v62 = vadd.f32 %v438_v46, %v351_v1  ;;  %v2219_v54 = vadd.f32 %v467_v45, %v352_v53 }
  0xf3   : > { %2420 = vst [vmem:[#allocation61_spill] sm:$0xff] %v2217_v62  ;;  %v383_v0 = vpop.f32.mrf.mxu0  ;;  %v412_v57 = vpop.f32.mrf.mxu1 }
  0xf4   : > { %2421 = vst [vmem:[#allocation62_spill] sm:$0xff] %v2219_v54  ;;  %v2221_v63 = vadd.f32 %v383_v0, %v349_v61  ;;  %v2223_v18 = vadd.f32 %v412_v57, %v350_v55  ;;  %v433_v61 = vadd.f32 %v432_v60, %v351_v1 }
  0xf6   : > { %2422 = vst [vmem:[#allocation63_spill] sm:$0xff] %v2221_v63 }
  0xf7   : > { %2423 = vst [vmem:[#allocation64_spill] sm:$0xff] %v2223_v18 }
  0xfa   : > { %v441_v51 = vpop.f32.mrf.mxu2  ;;  %v470_v35 = vpop.f32.mrf.mxu3 }
  0xfb   : > { %v2225_v52 = vadd.f32 %v441_v51, %v351_v1  ;;  %v2227_v50 = vadd.f32 %v470_v35, %v352_v53 }
  0xfd   : > { %2424 = vst [vmem:[#allocation65_spill] sm:$0xff] %v2225_v52  ;;  %v579_v48 = vpop.f32.mrf.mxu0  ;;  %v599_v44 = vpop.f32.mrf.mxu1 }
  0xfe   : > { %2425 = vst [vmem:[#allocation66_spill] sm:$0xff] %v2227_v50  ;;  %v642_v46 = vadd.f32 %v579_v48, %v375_v49  ;;  %v643_v62 = vadd.f32 %v599_v44, %v404_v47 }
 0x100   : > { %v1337_v45 = vmul.f32 -1.442695, %v642_v46  ;;  %v1338_v54 = vmul.f32 -1.442695, %v643_v62 }
 0x102   : > { %1437 = vpow2.f32 %v1337_v45 }
 0x103   : > { %1439 = vpow2.f32 %v1338_v54 }
 0x104   : > { %v639_v0 = vpop.f32.mrf.mxu3  ;;  %v619_v55 = vpop.f32.mrf.mxu2 }
 0x105   : > { %v645_v57 = vadd.f32 %v639_v0, %v462_v43  ;;  %v644_v47 = vadd.f32 %v619_v55, %v433_v61 }
 0x107   : > { %v1339_v18 = vmul.f32 -1.442695, %v645_v57 }
 0x108   : > { %v1438_v63 = vpop.eup %1437 }
 0x109   : > { %v1440_v42 = vpop.eup %1439  ;;  %v649_v51 = vadd.f32 1.0, %v1438_v63  ;;  %1441 = vpow2.f32 %v1339_v18 }
 0x10a   : > { %v668_v35 = vadd.f32 1.0, %v1440_v42 }
 0x10b   : > { %1443 = vrcp.f32 %v649_v51  ;;  %v661_v54 = vand.u32 2147483648, %v649_v51  ;;  %v659_v42 = vand.u32 2147483647, %v649_v51  ;;  %vm655_vm2 = vweird.f32 %v649_v51 }
 0x10c   : > { %1445 = vrcp.f32 %v668_v35  ;;  %v680_v49 = vand.u32 2147483648, %v668_v35  ;;  %v678_v46 = vand.u32 2147483647, %v668_v35  ;;  %vm674_vm3 = vweird.f32 %v668_v35 }
 0x10d   : > { %v662_v1 = vor.u32 1.1754944e-38, %v661_v54  ;;  %vm660_vm6 = vcmp.eq.f32.partialorder %v659_v42, 8.507059e+37 }
 0x10e   : > { %v681_v55 = vor.u32 1.1754944e-38, %v680_v49  ;;  %vm679_vm7 = vcmp.eq.f32.partialorder %v678_v46, 8.507059e+37 }
 0x10f   : > { %v1442_v59 = vpop.eup %1441 }
 0x110   : > { %v688_v48 = vadd.f32 1.0, %v1442_v59  ;;  %v490_v59 = vld [vmem:[#allocation3] sm:$0xff] }
 0x111   : > { %v1444_v44 = vpop.eup %1443 }
 0x112   : > { %v1446_v58 = vpop.eup %1445  ;;  %v651_v62 = vmul.f32 %v1444_v44, %v649_v51  ;;  %1447 = vrcp.f32 %v688_v48  ;;  %vm656_vm0 = vweird.f32 %v1444_v44  ;;  %v700_v54 = vand.u32 2147483648, %v688_v48 }
 0x113   : > { %v670_v53 = vmul.f32 %v1446_v58, %v668_v35  ;;  %1449 = vtanh.f32 %v644_v47  ;;  %vm675_vm1 = vweird.f32 %v1446_v58  ;;  %vm657_vm4 = vmor %vm655_vm2, %vm656_vm0  ;;  %vm694_vm9 = vweird.f32 %v688_v48 }
 0x114   : > { %v652_v56 = vsub.f32 1.0, %v651_v62  ;;  %vm676_vm5 = vmor %vm674_vm3, %vm675_vm1  ;;  %v698_v49 = vand.u32 2147483647, %v688_v48  ;;  %v701_v42 = vor.u32 1.1754944e-38, %v700_v54 }
 0x115   : > { %v671_v43 = vsub.f32 1.0, %v670_v53 }
 0x116   : > { %v653_v63 = vmul.f32 %v1444_v44, %v652_v56  ;;  %vm699_vm11 = vcmp.eq.f32.partialorder %v698_v49, 8.507059e+37 }
 0x117   : > { %v672_v18 = vmul.f32 %v1446_v58, %v671_v43 }
 0x118   : > { %v1448_v45 = vpop.eup %1447  ;;  %v654_v60 = vadd.f32 %v1444_v44, %v653_v63 }
 0x119   : > { %v673_v0 = vadd.f32 %v1446_v58, %v672_v18  ;;  %v690_v57 = vmul.f32 %v1448_v45, %v688_v48  ;;  %v1450_v47 = vpop.eup %1449  ;;  %vm695_vm8 = vweird.f32 %v1448_v45 }
 0x11a   : > { %v658_v61 = vsel %vm657_vm4, %v1444_v44, %v654_v60  ;;  %vm696_vm10 = vmor %vm694_vm9, %vm695_vm8 }
 0x11b   : > { %v663_v62 = vsel %vm660_vm6, %v662_v1, %v658_v61  ;;  %v677_v53 = vsel %vm676_vm5, %v1446_v58, %v673_v0  ;;  %v691_v56 = vsub.f32 1.0, %v690_v57 }
 0x11c   : > { %v682_v43 = vsel %vm679_vm7, %v681_v55, %v677_v53  ;;  %v705_v52 = vmul.f32 %v1450_v47, %v663_v62  ;;  %v2455_v55 = vld [vmem:[#allocation57_spill] sm:$0xff] }
 0x11d   : > { %v704_v50 = vmul.f32 %v682_v43, %v490_v59  ;;  %v692_v63 = vmul.f32 %v1448_v45, %v691_v56 }
 0x11f   : > { %v2229_v51 = vadd.f32 %v705_v52, %v704_v50  ;;  %v693_v35 = vadd.f32 %v1448_v45, %v692_v63 }
 0x121   : > { %1451 = vtanh.f32 %v2229_v51  ;;  %v697_v44 = vsel %vm696_vm10, %v1448_v45, %v693_v35 }
 0x122   : > { %v702_v18 = vsel %vm699_vm11, %v701_v42, %v697_v44 }
 0x127   : > { %v1452_v58 = vpop.eup %1451 }
 0x128   : > { %v708_v46 = vmul.f32 %v1452_v58, %v702_v18 }
 0x12a   : > { %732 = vmatmul.f32.vlgmr.msra.gmra.mxu0 %v708_v46  ;;  %752 = vmatmul.f32.vlgmr.msra.gmra.mxu1 %v708_v46 }
 0x12b   : > { %772 = vmatmul.f32.vlgmr.msra.gmra.mxu2 %v708_v46  ;;  %792 = vmatmul.f32.vlgmr.msra.gmra.mxu3 %v708_v46 }
 0x12c   : > { %1024 = vmatpush.msra.mxu0 %v1882_v2  ;;  %1044 = vmatpush.msra.mxu1 %v1884_v3  ;;  %v2426_v2 = vld [vmem:[#allocation29_spill] sm:$0xff]  ;;  %v2427_v3 = vld [vmem:[#allocation30_spill] sm:$0xff] }
 0x12d   : > { %1064 = vmatpush.msra.mxu2 %v1886_v4  ;;  %1084 = vmatpush.msra.mxu3 %v1888_v5  ;;  %v2428_v4 = vld [vmem:[#allocation31_spill] sm:$0xff]  ;;  %v2429_v5 = vld [vmem:[#allocation32_spill] sm:$0xff] }
 0x12e   : > { %1025 = vmatpush.msra.mxu0 %v1890_v6  ;;  %1045 = vmatpush.msra.mxu1 %v1892_v7  ;;  %v2430_v6 = vld [vmem:[#allocation33_spill] sm:$0xff]  ;;  %v2431_v7 = vld [vmem:[#allocation34_spill] sm:$0xff] }
 0x12f   : > { %1065 = vmatpush.msra.mxu2 %v1896_v8  ;;  %1085 = vmatpush.msra.mxu3 %v1898_v9  ;;  %v2432_v8 = vld [vmem:[#allocation35_spill] sm:$0xff]  ;;  %v2433_v9 = vld [vmem:[#allocation36_spill] sm:$0xff] }
 0x130   : > { %1026 = vmatpush.msra.mxu0 %v1902_v10  ;;  %1046 = vmatpush.msra.mxu1 %v1904_v11  ;;  %v2434_v10 = vld [vmem:[#allocation37_spill] sm:$0xff]  ;;  %v2435_v11 = vld [vmem:[#allocation38_spill] sm:$0xff] }
 0x131   : > { %1066 = vmatpush.msra.mxu2 %v1908_v12  ;;  %1086 = vmatpush.msra.mxu3 %v1910_v13  ;;  %v2436_v12 = vld [vmem:[#allocation39_spill] sm:$0xff]  ;;  %v2437_v13 = vld [vmem:[#allocation40_spill] sm:$0xff] }
 0x132   : > { %1027 = vmatpush.msra.mxu0 %v1914_v14  ;;  %1047 = vmatpush.msra.mxu1 %v1916_v15  ;;  %v2438_v14 = vld [vmem:[#allocation41_spill] sm:$0xff]  ;;  %v2439_v15 = vld [vmem:[#allocation42_spill] sm:$0xff] }
 0x133   : > { %1067 = vmatpush.msra.mxu2 %v1920_v16  ;;  %1087 = vmatpush.msra.mxu3 %v1922_v17  ;;  %v2440_v16 = vld [vmem:[#allocation43_spill] sm:$0xff]  ;;  %v2441_v17 = vld [vmem:[#allocation44_spill] sm:$0xff] }
 0x134   : > { %1028 = vmatpush.msra.mxu0 %v1931_v19  ;;  %1048 = vmatpush.msra.mxu1 %v1933_v20  ;;  %v2442_v19 = vld [vmem:[#allocation45_spill] sm:$0xff]  ;;  %v2443_v20 = vld [vmem:[#allocation46_spill] sm:$0xff] }
 0x135   : > { %1068 = vmatpush.msra.mxu2 %v1935_v21  ;;  %1088 = vmatpush.msra.mxu3 %v1937_v22  ;;  %v2444_v21 = vld [vmem:[#allocation47_spill] sm:$0xff]  ;;  %v2445_v22 = vld [vmem:[#allocation48_spill] sm:$0xff] }
 0x136   : > { %1029 = vmatpush.msra.mxu0 %v1939_v23  ;;  %1049 = vmatpush.msra.mxu1 %v1941_v24  ;;  %v2446_v23 = vld [vmem:[#allocation49_spill] sm:$0xff]  ;;  %v2447_v24 = vld [vmem:[#allocation50_spill] sm:$0xff] }
 0x137   : > { %1069 = vmatpush.msra.mxu2 %v1945_v25  ;;  %1089 = vmatpush.msra.mxu3 %v1947_v26  ;;  %v2448_v25 = vld [vmem:[#allocation51_spill] sm:$0xff]  ;;  %v2449_v26 = vld [vmem:[#allocation52_spill] sm:$0xff] }
 0x138   : > { %1030 = vmatpush.msra.mxu0 %v1951_v27  ;;  %1050 = vmatpush.msra.mxu1 %v1953_v28  ;;  %v2450_v27 = vld [vmem:[#allocation53_spill] sm:$0xff]  ;;  %v2451_v28 = vld [vmem:[#allocation54_spill] sm:$0xff] }
 0x139   : > { %1070 = vmatpush.msra.mxu2 %v1957_v29  ;;  %1090 = vmatpush.msra.mxu3 %v1959_v30 }
 0x13a   : > { %1031 = vmatpush.msra.mxu0 %v1963_v31  ;;  %1051 = vmatpush.msra.mxu1 %v1965_v32  ;;  %v2452_v31 = vld [vmem:[#allocation55_spill] sm:$0xff] }
 0x13b   : > { %1071 = vmatpush.msra.mxu2 %v1969_v33  ;;  %1091 = vmatpush.msra.mxu3 %v1971_v34  ;;  %v2453_v33 = vld [vmem:[#allocation56_spill] sm:$0xff] }
 0x13c   : > { %1032 = vmatpush.msra.mxu0 %v1980_v36  ;;  %1052 = vmatpush.msra.mxu1 %v1982_v37 }
 0x13d   : > { %1072 = vmatpush.msra.mxu2 %v1984_v38  ;;  %1092 = vmatpush.msra.mxu3 %v1986_v39  ;;  %v2454_v39 = vld [vmem:[#allocation58_spill] sm:$0xff] }
 0x13e   : > { %1033 = vmatpush.msra.mxu0 %v1988_v40  ;;  %1053 = vmatpush.msra.mxu1 %v1990_v41 }
 0x13f   : > { %1073 = vmatpush.msra.mxu2 %v2426_v2  ;;  %1093 = vmatpush.msra.mxu3 %v2427_v3 }
 0x140   : > { %1034 = vmatpush.msra.mxu0 %v2428_v4  ;;  %1054 = vmatpush.msra.mxu1 %v2429_v5 }
 0x141   : > { %1074 = vmatpush.msra.mxu2 %v2430_v6  ;;  %1094 = vmatpush.msra.mxu3 %v2431_v7 }
 0x142   : > { %1035 = vmatpush.msra.mxu0 %v2432_v8  ;;  %1055 = vmatpush.msra.mxu1 %v2433_v9 }
 0x143   : > { %1075 = vmatpush.msra.mxu2 %v2434_v10  ;;  %1095 = vmatpush.msra.mxu3 %v2435_v11 }
 0x144   : > { %1036 = vmatpush.msra.mxu0 %v2436_v12  ;;  %1056 = vmatpush.msra.mxu1 %v2437_v13 }
 0x145   : > { %1076 = vmatpush.msra.mxu2 %v2438_v14  ;;  %1096 = vmatpush.msra.mxu3 %v2439_v15 }
 0x146   : > { %1037 = vmatpush.msra.mxu0 %v2440_v16  ;;  %1057 = vmatpush.msra.mxu1 %v2441_v17 }
 0x147   : > { %1077 = vmatpush.msra.mxu2 %v2442_v19  ;;  %1097 = vmatpush.msra.mxu3 %v2443_v20 }
 0x148   : > { %1038 = vmatpush.msra.mxu0 %v2444_v21  ;;  %1058 = vmatpush.msra.mxu1 %v2445_v22 }
 0x149   : > { %1078 = vmatpush.msra.mxu2 %v2446_v23  ;;  %1098 = vmatpush.msra.mxu3 %v2447_v24  ;;  %v2456_v24 = vld [vmem:[#allocation59_spill] sm:$0xff] }
 0x14a   : > { %1039 = vmatpush.msra.mxu0 %v2448_v25  ;;  %1059 = vmatpush.msra.mxu1 %v2449_v26  ;;  %v2457_v26 = vld [vmem:[#allocation60_spill] sm:$0xff] }
 0x14b   : > { %1079 = vmatpush.msra.mxu2 %v2450_v27  ;;  %1099 = vmatpush.msra.mxu3 %v2451_v28 }
 0x1a7   : > { %v733_v29 = vpop.f32.mrf.mxu0  ;;  %v753_v30 = vpop.f32.mrf.mxu1 }
 0x1a8   : > { %v796_v32 = vadd.f32 %v733_v29, %v2452_v31  ;;  %v797_v34 = vadd.f32 %v753_v30, %v2453_v33  ;;  %v2458_v31 = vld [vmem:[#allocation62_spill] sm:$0xff] }
 0x1aa   : > { %v1340_v36 = vmul.f32 -1.442695, %v796_v32  ;;  %v1341_v37 = vmul.f32 -1.442695, %v797_v34 }
 0x1ac   : > { %1453 = vpow2.f32 %v1340_v36 }
 0x1ad   : > { %1455 = vpow2.f32 %v1341_v37 }
 0x1ae   : > { %v793_v38 = vpop.f32.mrf.mxu3  ;;  %v773_v60 = vpop.f32.mrf.mxu2 }
 0x1af   : > { %v799_v40 = vadd.f32 %v793_v38, %v2454_v39  ;;  %v798_v59 = vadd.f32 %v773_v60, %v2455_v55 }
 0x1b1   : > { %v1342_v41 = vmul.f32 -1.442695, %v799_v40 }
 0x1b2   : > { %v1454_v52 = vpop.eup %1453 }
 0x1b3   : > { %v1456_v50 = vpop.eup %1455  ;;  %v803_v48 = vadd.f32 1.0, %v1454_v52  ;;  %1457 = vpow2.f32 %v1342_v41 }
 0x1b4   : > { %v822_v45 = vadd.f32 1.0, %v1456_v50  ;;  %v2459_v50 = vld [vmem:[#allocation61_spill] sm:$0xff] }
 0x1b5   : > { %1459 = vrcp.f32 %v803_v48  ;;  %v815_v43 = vand.u32 2147483648, %v803_v48  ;;  %v813_v54 = vand.u32 2147483647, %v803_v48  ;;  %vm809_vm14 = vweird.f32 %v803_v48 }
 0x1b6   : > { %1461 = vrcp.f32 %v822_v45  ;;  %v834_v63 = vand.u32 2147483648, %v822_v45  ;;  %v832_v44 = vand.u32 2147483647, %v822_v45  ;;  %vm828_vm15 = vweird.f32 %v822_v45 }
 0x1b7   : > { %v816_v18 = vor.u32 1.1754944e-38, %v815_v43  ;;  %vm814_vm2 = vcmp.eq.f32.partialorder %v813_v54, 8.507059e+37 }
 0x1b8   : > { %v835_v3 = vor.u32 1.1754944e-38, %v834_v63  ;;  %vm833_vm3 = vcmp.eq.f32.partialorder %v832_v44, 8.507059e+37 }
 0x1b9   : > { %v1458_v1 = vpop.eup %1457 }
 0x1ba   : > { %v842_v0 = vadd.f32 1.0, %v1458_v1 }
 0x1bb   : > { %v1460_v57 = vpop.eup %1459 }
 0x1bc   : > { %v1462_v61 = vpop.eup %1461  ;;  %v805_v47 = vmul.f32 %v1460_v57, %v803_v48  ;;  %1463 = vrcp.f32 %v842_v0  ;;  %vm810_vm12 = vweird.f32 %v1460_v57  ;;  %v854_v15 = vand.u32 2147483648, %v842_v0 }
 0x1bd   : > { %v824_v62 = vmul.f32 %v1462_v61, %v822_v45  ;;  %1465 = vtanh.f32 %v798_v59  ;;  %vm829_vm13 = vweird.f32 %v1462_v61  ;;  %vm811_vm0 = vmor %vm809_vm14, %vm810_vm12  ;;  %vm848_vm5 = vweird.f32 %v842_v0 }
 0x1be   : > { %v806_v53 = vsub.f32 1.0, %v805_v47  ;;  %vm830_vm1 = vmor %vm828_vm15, %vm829_vm13  ;;  %v852_v16 = vand.u32 2147483647, %v842_v0  ;;  %v855_v19 = vor.u32 1.1754944e-38, %v854_v15 }
 0x1bf   : > { %v825_v56 = vsub.f32 1.0, %v824_v62 }
 0x1c0   : > { %v807_v35 = vmul.f32 %v1460_v57, %v806_v53  ;;  %vm853_vm7 = vcmp.eq.f32.partialorder %v852_v16, 8.507059e+37 }
 0x1c1   : > { %v826_v49 = vmul.f32 %v1462_v61, %v825_v56 }
 0x1c2   : > { %v1464_v42 = vpop.eup %1463  ;;  %v808_v58 = vadd.f32 %v1460_v57, %v807_v35 }
 0x1c3   : > { %v827_v46 = vadd.f32 %v1462_v61, %v826_v49  ;;  %v844_v2 = vmul.f32 %v1464_v42, %v842_v0  ;;  %v1466_v5 = vpop.eup %1465  ;;  %vm849_vm4 = vweird.f32 %v1464_v42 }
 0x1c4   : > { %v812_v4 = vsel %vm811_vm0, %v1460_v57, %v808_v58  ;;  %vm850_vm6 = vmor %vm848_vm5, %vm849_vm4 }
 0x1c5   : > { %v817_v6 = vsel %vm814_vm2, %v816_v18, %v812_v4  ;;  %v831_v7 = vsel %vm830_vm1, %v1462_v61, %v827_v46  ;;  %v845_v8 = vsub.f32 1.0, %v844_v2 }
 0x1c6   : > { %v836_v9 = vsel %vm833_vm3, %v835_v3, %v831_v7  ;;  %v859_v10 = vmul.f32 %v1466_v5, %v817_v6 }
 0x1c7   : > { %v858_v11 = vmul.f32 %v836_v9, %v2229_v51  ;;  %v846_v12 = vmul.f32 %v1464_v42, %v845_v8 }
 0x1c9   : > { %v2301_v13 = vadd.f32 %v859_v10, %v858_v11  ;;  %v847_v14 = vadd.f32 %v1464_v42, %v846_v12 }
 0x1cb   : > { %1467 = vtanh.f32 %v2301_v13  ;;  %v851_v17 = vsel %vm850_vm6, %v1464_v42, %v847_v14 }
 0x1cc   : > { %v856_v21 = vsel %vm853_vm7, %v855_v19, %v851_v17  ;;  %v2460_v17 = vld [vmem:[#allocation63_spill] sm:$0xff] }
 0x1d1   : > { %v1468_v20 = vpop.eup %1467 }
 0x1d2   : > { %v862_v22 = vmul.f32 %v1468_v20, %v856_v21  ;;  %v2461_v20 = vld [vmem:[#allocation64_spill] sm:$0xff] }
 0x1d4   : > { %886 = vmatmul.f32.vlgmr.msrb.gmra.mxu0 %v862_v22  ;;  %906 = vmatmul.f32.vlgmr.msrb.gmra.mxu1 %v862_v22 }
 0x1d5   : > { %926 = vmatmul.f32.vlgmr.msrb.gmra.mxu2 %v862_v22  ;;  %946 = vmatmul.f32.vlgmr.msrb.gmra.mxu3 %v862_v22 }
 0x251   : > { %v887_v51 = vpop.f32.mrf.mxu0  ;;  %v907_v23 = vpop.f32.mrf.mxu1 }
 0x252   : > { %v950_v25 = vadd.f32 %v887_v51, %v2456_v24  ;;  %v951_v27 = vadd.f32 %v907_v23, %v2457_v26  ;;  %v2462_v24 = vld [vmem:[#allocation66_spill] sm:$0xff] }
 0x254   : > { %v1343_v28 = vmul.f32 -1.442695, %v950_v25  ;;  %v1344_v29 = vmul.f32 -1.442695, %v951_v27 }
 0x256   : > { %1469 = vpow2.f32 %v1343_v28 }
 0x257   : > { %1471 = vpow2.f32 %v1344_v29 }
 0x258   : > { %v947_v30 = vpop.f32.mrf.mxu3  ;;  %v927_v39 = vpop.f32.mrf.mxu2 }
 0x259   : > { %v953_v32 = vadd.f32 %v947_v30, %v2458_v31  ;;  %v952_v48 = vadd.f32 %v927_v39, %v2459_v50 }
 0x25b   : > { %v1345_v33 = vmul.f32 -1.442695, %v953_v32 }
 0x25c   : > { %v1470_v34 = vpop.eup %1469 }
 0x25d   : > { %v1472_v36 = vpop.eup %1471  ;;  %v957_v37 = vadd.f32 1.0, %v1470_v34  ;;  %1473 = vpow2.f32 %v1345_v33 }
 0x25e   : > { %v976_v38 = vadd.f32 1.0, %v1472_v36  ;;  %v2463_v36 = vld [vmem:[#allocation65_spill] sm:$0xff] }
 0x25f   : > { %1475 = vrcp.f32 %v957_v37  ;;  %v969_v55 = vand.u32 2147483648, %v957_v37  ;;  %v967_v47 = vand.u32 2147483647, %v957_v37  ;;  %vm963_vm10 = vweird.f32 %v957_v37 }
 0x260   : > { %1477 = vrcp.f32 %v976_v38  ;;  %v988_v59 = vand.u32 2147483648, %v976_v38  ;;  %v986_v53 = vand.u32 2147483647, %v976_v38  ;;  %vm982_vm11 = vweird.f32 %v976_v38 }
 0x261   : > { %v970_v63 = vor.u32 1.1754944e-38, %v969_v55  ;;  %vm968_vm14 = vcmp.eq.f32.partialorder %v967_v47, 8.507059e+37 }
 0x262   : > { %v989_v49 = vor.u32 1.1754944e-38, %v988_v59  ;;  %vm987_vm15 = vcmp.eq.f32.partialorder %v986_v53, 8.507059e+37 }
 0x263   : > { %v1474_v40 = vpop.eup %1473 }
 0x264   : > { %v996_v41 = vadd.f32 1.0, %v1474_v40 }
 0x265   : > { %v1476_v52 = vpop.eup %1475 }
 0x266   : > { %v1478_v45 = vpop.eup %1477  ;;  %v959_v60 = vmul.f32 %v1476_v52, %v957_v37  ;;  %1479 = vrcp.f32 %v996_v41  ;;  %vm964_vm8 = vweird.f32 %v1476_v52  ;;  %v1008_v8 = vand.u32 2147483648, %v996_v41 }
 0x267   : > { %v978_v1 = vmul.f32 %v1478_v45, %v976_v38  ;;  %1481 = vtanh.f32 %v952_v48  ;;  %vm983_vm9 = vweird.f32 %v1478_v45  ;;  %vm965_vm12 = vmor %vm963_vm10, %vm964_vm8  ;;  %vm1002_vm1 = vweird.f32 %v996_v41 }
 0x268   : > { %v960_v0 = vsub.f32 1.0, %v959_v60  ;;  %vm984_vm13 = vmor %vm982_vm11, %vm983_vm9  ;;  %v1006_v9 = vand.u32 2147483647, %v996_v41  ;;  %v1009_v11 = vor.u32 1.1754944e-38, %v1008_v8 }
 0x269   : > { %v979_v57 = vsub.f32 1.0, %v978_v1 }
 0x26a   : > { %v961_v61 = vmul.f32 %v1476_v52, %v960_v0  ;;  %vm1007_vm3 = vcmp.eq.f32.partialorder %v1006_v9, 8.507059e+37 }
 0x26b   : > { %v980_v62 = vmul.f32 %v1478_v45, %v979_v57 }
 0x26c   : > { %v1480_v56 = vpop.eup %1479  ;;  %v962_v43 = vadd.f32 %v1476_v52, %v961_v61 }
 0x26d   : > { %v981_v35 = vadd.f32 %v1478_v45, %v980_v62  ;;  %v998_v54 = vmul.f32 %v1480_v56, %v996_v41  ;;  %v1482_v42 = vpop.eup %1481  ;;  %vm1003_vm0 = vweird.f32 %v1480_v56 }
 0x26e   : > { %v966_v44 = vsel %vm965_vm12, %v1476_v52, %v962_v43  ;;  %vm1004_vm2 = vmor %vm1002_vm1, %vm1003_vm0 }
 0x26f   : > { %v971_v58 = vsel %vm968_vm14, %v970_v63, %v966_v44  ;;  %v985_v18 = vsel %vm984_vm13, %v1478_v45, %v981_v35  ;;  %v999_v46 = vsub.f32 1.0, %v998_v54 }
 0x270   : > { %v990_v2 = vsel %vm987_vm15, %v989_v49, %v985_v18  ;;  %v1013_v3 = vmul.f32 %v1482_v42, %v971_v58 }
 0x271   : > { %v1012_v4 = vmul.f32 %v990_v2, %v2301_v13  ;;  %v1000_v5 = vmul.f32 %v1480_v56, %v999_v46 }
 0x273   : > { %v2309_v6 = vadd.f32 %v1013_v3, %v1012_v4  ;;  %v1001_v7 = vadd.f32 %v1480_v56, %v1000_v5 }
 0x275   : > { %1483 = vtanh.f32 %v2309_v6  ;;  %v1005_v10 = vsel %vm1004_vm2, %v1480_v56, %v1001_v7 }
 0x276   : > { %v1010_v14 = vsel %vm1007_vm3, %v1009_v11, %v1005_v10 }
 0x27b   : > { %v1484_v12 = vpop.eup %1483 }
 0x27c   : > { %v1016_v15 = vmul.f32 %v1484_v12, %v1010_v14 }
 0x27e   : > { %1040 = vmatmul.f32.vlgmr.msra.gmra.mxu0 %v1016_v15  ;;  %1060 = vmatmul.f32.vlgmr.msra.gmra.mxu1 %v1016_v15 }
 0x27f   : > { %1080 = vmatmul.f32.vlgmr.msra.gmra.mxu2 %v1016_v15  ;;  %1100 = vmatmul.f32.vlgmr.msra.gmra.mxu3 %v1016_v15 }
 0x2fb   : > { %v1041_v13 = vpop.f32.mrf.mxu0  ;;  %v1061_v16 = vpop.f32.mrf.mxu1 }
 0x2fc   : > { %v1104_v19 = vadd.f32 %v1041_v13, %v2460_v17  ;;  %v1105_v21 = vadd.f32 %v1061_v16, %v2461_v20 }
 0x2fe   : > { %v1346_v22 = vmul.f32 -1.442695, %v1104_v19  ;;  %v1347_v51 = vmul.f32 -1.442695, %v1105_v21 }
 0x300   : > { %1485 = vpow2.f32 %v1346_v22 }
 0x301   : > { %1487 = vpow2.f32 %v1347_v51 }
 0x302   : > { %v1101_v23 = vpop.f32.mrf.mxu3  ;;  %v1081_v31 = vpop.f32.mrf.mxu2 }
 0x303   : > { %v1107_v25 = vadd.f32 %v1101_v23, %v2462_v24  ;;  %v1106_v37 = vadd.f32 %v1081_v31, %v2463_v36 }
 0x305   : > { %v1348_v26 = vmul.f32 -1.442695, %v1107_v25 }
 0x306   : > { %v1486_v27 = vpop.eup %1485 }
 0x307   : > { %v1488_v28 = vpop.eup %1487  ;;  %v1111_v29 = vadd.f32 1.0, %v1486_v27  ;;  %1489 = vpow2.f32 %v1348_v26 }
 0x308   : > { %v1130_v30 = vadd.f32 1.0, %v1488_v28 }
 0x309   : > { %1491 = vrcp.f32 %v1111_v29  ;;  %v1123_v50 = vand.u32 2147483648, %v1111_v29  ;;  %v1121_v60 = vand.u32 2147483647, %v1111_v29  ;;  %vm1117_vm6 = vweird.f32 %v1111_v29 }
 0x30a   : > { %1493 = vrcp.f32 %v1130_v30  ;;  %v1142_v48 = vand.u32 2147483648, %v1130_v30  ;;  %v1140_v0 = vand.u32 2147483647, %v1130_v30  ;;  %vm1136_vm7 = vweird.f32 %v1130_v30 }
 0x30b   : > { %v1124_v59 = vor.u32 1.1754944e-38, %v1123_v50  ;;  %vm1122_vm10 = vcmp.eq.f32.partialorder %v1121_v60, 8.507059e+37 }
 0x30c   : > { %v1143_v62 = vor.u32 1.1754944e-38, %v1142_v48  ;;  %vm1141_vm11 = vcmp.eq.f32.partialorder %v1140_v0, 8.507059e+37 }
 0x30d   : > { %v1490_v32 = vpop.eup %1489 }
 0x30e   : > { %v1150_v33 = vadd.f32 1.0, %v1490_v32 }
 0x30f   : > { %v1492_v34 = vpop.eup %1491 }
 0x310   : > { %v1494_v38 = vpop.eup %1493  ;;  %v1113_v39 = vmul.f32 %v1492_v34, %v1111_v29  ;;  %1495 = vrcp.f32 %v1150_v33  ;;  %vm1118_vm4 = vweird.f32 %v1492_v34  ;;  %v1162_v46 = vand.u32 2147483648, %v1150_v33 }
 0x311   : > { %v1132_v40 = vmul.f32 %v1494_v38, %v1130_v30  ;;  %1497 = vtanh.f32 %v1106_v37  ;;  %vm1137_vm5 = vweird.f32 %v1494_v38  ;;  %vm1119_vm8 = vmor %vm1117_vm6, %vm1118_vm4  ;;  %vm1156_vm13 = vweird.f32 %v1150_v33 }
 0x312   : > { %v1114_v41 = vsub.f32 1.0, %v1113_v39  ;;  %vm1138_vm9 = vmor %vm1136_vm7, %vm1137_vm5  ;;  %v1160_v2 = vand.u32 2147483647, %v1150_v33  ;;  %v1163_v4 = vor.u32 1.1754944e-38, %v1162_v46 }
 0x313   : > { %v1133_v52 = vsub.f32 1.0, %v1132_v40 }
 0x314   : > { %v1115_v45 = vmul.f32 %v1492_v34, %v1114_v41  ;;  %vm1161_vm15 = vcmp.eq.f32.partialorder %v1160_v2, 8.507059e+37 }
 0x315   : > { %v1134_v1 = vmul.f32 %v1494_v38, %v1133_v52 }
 0x316   : > { %v1496_v57 = vpop.eup %1495  ;;  %v1116_v55 = vadd.f32 %v1492_v34, %v1115_v45 }
 0x317   : > { %v1135_v61 = vadd.f32 %v1494_v38, %v1134_v1  ;;  %v1152_v47 = vmul.f32 %v1496_v57, %v1150_v33  ;;  %v1498_v56 = vpop.eup %1497  ;;  %vm1157_vm12 = vweird.f32 %v1496_v57 }
 0x318   : > { %v1120_v53 = vsel %vm1119_vm8, %v1492_v34, %v1116_v55  ;;  %vm1158_vm14 = vmor %vm1156_vm13, %vm1157_vm12 }
 0x319   : > { %v1125_v43 = vsel %vm1122_vm10, %v1124_v59, %v1120_v53  ;;  %v1139_v63 = vsel %vm1138_vm9, %v1494_v38, %v1135_v61  ;;  %v1153_v35 = vsub.f32 1.0, %v1152_v47 }
 0x31a   : > { %v1144_v54 = vsel %vm1141_vm11, %v1143_v62, %v1139_v63  ;;  %v1167_v49 = vmul.f32 %v1498_v56, %v1125_v43 }
 0x31b   : > { %v1166_v44 = vmul.f32 %v1144_v54, %v2309_v6  ;;  %v1154_v42 = vmul.f32 %v1496_v57, %v1153_v35 }
 0x31d   : > { %v1168_v58 = vadd.f32 %v1167_v49, %v1166_v44  ;;  %v1155_v18 = vadd.f32 %v1496_v57, %v1154_v42 }
 0x31f   : > { %1499 = vtanh.f32 %v1168_v58  ;;  %1172 = vst [vmem:[#allocation3] sm:$0xff] %v1168_v58  ;;  %v1159_v3 = vsel %vm1158_vm14, %v1496_v57, %v1155_v18 }
 0x320   : > { %v1164_v7 = vsel %vm1161_vm15, %v1163_v4, %v1159_v3 }
 0x324   : > { %1176 = sbr.rel (%p1349_p2) target bundleno = 970 (0x3ca), region = 60 }
 0x325   : > { %v1500_v5 = vpop.eup %1499 }
 0x326   : > { %v1170_v8 = vmul.f32 %v1500_v5, %v1164_v7 }
 0x328   : > { %1171 = vst [vmem:[#allocation2] sm:$0xff] %v1170_v8 }
 0x329   : > { %v1193_v6 = vld [vmem:[#allocation7 + $0x78] sm:$0xff]  ;;  %v1192_v9 = vld [vmem:[#allocation7 + $0x70] sm:$0xff]  ;;  %v1191_v10 = vld [vmem:[#allocation7 + $0x68] sm:$0xff] }
 0x32a   : > { %1198 = vmatpush.msra.mxu0 %v1193_v6  ;;  %v1190_v11 = vld [vmem:[#allocation7 + $0x60] sm:$0xff]  ;;  %v1189_v12 = vld [vmem:[#allocation7 + $0x58] sm:$0xff]  ;;  %v1188_v14 = vld [vmem:[#allocation7 + $0x50] sm:$0xff] }
 0x32b   : > { %v1187_v15 = vld [vmem:[#allocation7 + $0x48] sm:$0xff]  ;;  %v1186_v13 = vld [vmem:[#allocation7 + $0x40] sm:$0xff]  ;;  %v1185_v16 = vld [vmem:[#allocation7 + $0x38] sm:$0xff] }
 0x32c   : > { %1199 = vmatpush.msra.mxu0 %v1192_v9  ;;  %v1184_v17 = vld [vmem:[#allocation7 + $0x30] sm:$0xff]  ;;  %v1183_v19 = vld [vmem:[#allocation7 + $0x28] sm:$0xff]  ;;  %v1182_v20 = vld [vmem:[#allocation7 + $0x20] sm:$0xff] }
 0x32d   : > { %v1181_v21 = vld [vmem:[#allocation7 + $0x18] sm:$0xff]  ;;  %v1180_v22 = vld [vmem:[#allocation7 + $0x10] sm:$0xff]  ;;  %v1179_v51 = vld [vmem:[#allocation7 + $0x8] sm:$0xff] }
 0x32e   : > { %1200 = vmatpush.msra.mxu0 %v1191_v10  ;;  %v1178_v23 = vld [vmem:[#allocation7] sm:$0xff]  ;;  %v1501_v25 = vld [vmem:[%s2349_s5] ss:$0 sm:$0xff] }
 0x32f   : > { %v1177_v24 = vld [vmem:[#allocation2] sm:$0xff] }
 0x330   : > { %1201 = vmatpush.msra.mxu0 %v1190_v11 }
 0x332   : > { %1202 = vmatpush.msra.mxu0 %v1189_v12 }
 0x334   : > { %1203 = vmatpush.msra.mxu0 %v1188_v14 }
 0x336   : > { %1204 = vmatpush.msra.mxu0 %v1187_v15 }
 0x338   : > { %1205 = vmatpush.msra.mxu0 %v1186_v13 }
 0x33a   : > { %1206 = vmatpush.msra.mxu0 %v1185_v16 }
 0x33c   : > { %1207 = vmatpush.msra.mxu0 %v1184_v17 }
 0x33e   : > { %1208 = vmatpush.msra.mxu0 %v1183_v19 }
 0x340   : > { %1209 = vmatpush.msra.mxu0 %v1182_v20 }
 0x342   : > { %1210 = vmatpush.msra.mxu0 %v1181_v21 }
 0x344   : > { %1211 = vmatpush.msra.mxu0 %v1180_v22 }
 0x346   : > { %1212 = vmatpush.msra.mxu0 %v1179_v51 }
 0x348   : > { %1213 = vmatpush.msra.mxu0 %v1178_v23 }
 0x349   : > { %1214 = vmatmul.f32.vlgmr.msra.gmra.mxu0 %v1177_v24 }
 0x3c6   : > { %v1215_v26 = vpop.f32.mrf.mxu0 }
 0x3c7   : > { %v1216_v27 = vadd.f32 %v1501_v25, %v1215_v26 }
 0x3c9   : > { %1218 = vst [vmem:[#allocation14] sm:$0xff] %v1216_v27 }
 0x3ca PF: > { %s2464_s20 = sadd.s32 4294967295, %s1726_s26   ;;  %s1229_s28 = sshll.u32 %s2350_s6, 4  ;;  %s1230_s28 = int_to_ptr.hbm [resolvable:$true] %s1229_s28 }
 0x3cb   : > { %p1379_p3 = scmp.eq.s32.totalorder %s2464_s20, 1  ;;  %s1735_s11 = smov [#allocation14]  }
 0x3cc   : > { %s1227_s14 = sshll.u32 %s1735_s11, 4  ;;  %s1228_s14 = int_to_ptr.vmem [resolvable:$true] %s1227_s14 }
 0x3cd   : > { %1365 = dma.vmem_to_hbm [thread:$0]  (%p1379_p3), %s1228_s14, 128, %s1230_s28, [#allocation11]  }
 0x3ce   : > { %1701 = dma.done.wait (%p1379_p3), [#allocation11], 128  }
 0x3cf   : > { %1703 = vsyncadd (%p1379_p3), [#allocation11], 4294967168 }
 0x3d0 PF: > { %s21_s26 = sadd.s32 1, %s1726_s26   ;;  %s2465_s21 = smov %s1710_s22 }
 0x3d1   : > { %p18_p4 = scmp.ge.s32.totalorder %s21_s26, 4   ;;  %s2466_s22 = smov %s1714_s23 }
 0x3d2   : > { %s2467_s23 = smov %s1854_s27  ;;  %s2468_s24 = smov %s1722_s25 }
 0x3d3   : > { %s2469_s25 = smov %s2471_s15  ;;  %20 = sbr.rel (!%p18_p4) target bundleno = 8 (0x8), region = 102 }
 0x3d8   :  { %1243 = vsyncpa [#allocation10], 1 }
 0x3d9   :  { %1245 = vsyncpa [#allocation10 + $0x1], 1 }
 0x3da   :  { %1246 = vsyncpa [#allocation13], 1 }
 0x3db   :  { %1247 = vsyncpa [#allocation11], 1 }
 0x3dc   :  { %1249 = vsyncpa [#allocation11 + $0x1], 1 }
 0x3dd   :  { %1250 = vsyncmov [#allocation8] }
 0x3e0   :  { %s1251_s16 = vpop.sfrf %1250 }
 0x3e1   :  { %p1354_p5 = scmp.ne.s32.totalorder %s1251_s16, 0 }
 0x3e3   :  { %1255 = shalt.err (%p1354_p5)  }
 0x3e4   :  { %1257 = vsyncmov [#allocation8 + $0x1] }
 0x3e7   :  { %s1258_s7 = vpop.sfrf %1257 }
 0x3e8   :  { %p1355_p6 = scmp.ne.s32.totalorder %s1258_s7, 0 }
 0x3ea   :  { %1262 = shalt.err (%p1355_p6)  }
 0x3eb   :  { %1264 = vsyncmov [#allocation8 + $0x2] }
 0x3ee   :  { %s1265_s27 = vpop.sfrf %1264 }
 0x3ef   :  { %p1356_p7 = scmp.ne.s32.totalorder %s1265_s27, 0 }
 0x3f1   :  { %1269 = shalt.err (%p1356_p7)  }

</bundles_post_ra>
